<compile_context>
chip_gen: v7x
topology: tpu7x:2x2x1
jax: 0.10.0
libtpu: 0.0.40
codegen_flags: <defaults>
</compile_context>

<pallas_src>
import math

import jax
import jax.numpy as jnp
from jax.experimental import pallas as pl
from jax.experimental.pallas import tpu as pltpu

LOG_STD_MAX = 2.0
LOG_STD_MIN = -20.0
NUM_LAYERS = 2          # fixed, matching the PyTorch module
_UNROLL_T_MAX = 16      # static unroll threshold for the time loop


def actor_lstm_kernel(bounds_ref,                        # SMEM: [act_low, act_high]
                      proj_ref, price_ref, eps_ref,      # activations
                      whh0_ref,                          # LSTM layer 0 (recurrent only)
                      wih1_ref, whh1_ref, blstm1_ref,    # LSTM layer 1 (split dots)
                      wp_ref, bp_ref,                    # price Linear
                      w1h_ref, w1p_ref, bm1_ref,         # MLP layer 1 (split: h1 | price)
                      w2_ref, bm2_ref,                   # MLP layer 2
                      whead_ref, bhead_ref,              # fused [mu | log_std] head
                      out_ref):                          # (Bt, OUT_W) packed, lane-padded
    T = proj_ref.shape[0]
    B = proj_ref.shape[1]
    H = whh0_ref.shape[0]
    A = eps_ref.shape[1]

    act_low = bounds_ref[0]
    act_high = bounds_ref[1]

    whh0 = whh0_ref[...]
    wih1 = wih1_ref[...]
    whh1 = whh1_ref[...]
    blstm1 = blstm1_ref[...]

    def mdot(a, w):
        # Weights may be bf16 (v7x VMEM / MXU path); accumulate in f32.
        return jnp.dot(a.astype(w.dtype), w, preferred_element_type=jnp.float32)

    def gates_to_hc(gates, c):
        # Gate columns pre-permuted to [i, f, o | g]: one tanh feeds all three
        # sigmoid gates over [:3H], one tanh over [3H:] (half the EUP work of
        # activating the full 4H width twice).
        sig = 0.5 * (jnp.tanh(0.5 * gates[:, :3 * H]) + 1.0)
        g = jnp.tanh(gates[:, 3 * H:])
        i = sig[:, 0 * H:1 * H]
        f = sig[:, 1 * H:2 * H]
        o = sig[:, 2 * H:3 * H]
        c_new = f * c + i * g
        h_new = o * jnp.tanh(c_new)
        return h_new, c_new

    def step(t_idx, carry):
        h0, c0, h1, c1 = carry
        # Layer 0: x @ W_ih0 + b hoisted to the wrapper; only the recurrent
        # matmul sits on the serial chain.
        g0 = proj_ref[t_idx] + mdot(h0, whh0)
        h0, c0 = gates_to_hc(g0, c0)
        # Layer 1: split ih/hh dots (no per-step lane concat); h1 @ W_hh1 can
        # issue as soon as h1_{t-1} exists, overlapping layer 0 of step t.
        g1 = mdot(h0, wih1) + mdot(h1, whh1) + blstm1
        h1, c1 = gates_to_hc(g1, c1)
        return h0, c0, h1, c1

    z = jnp.zeros((B, H), jnp.float32)
    carry = (z, z, z, z)
    if T <= _UNROLL_T_MAX:
        # Small static T: full unroll lets the scheduler overlap adjacent steps.
        for t in range(T):
            carry = step(t, carry)
    else:
        # Long sequences: bounded vreg pressure / compile time; projections
        # stay in the VMEM ref and are loaded one step at a time.
        carry = jax.lax.fori_loop(0, T, step, carry, unroll=2)
    h1 = carry[2]                                        # == hn[-1]

    price_feat = mdot(price_ref[...], wp_ref[...]) + bp_ref[...]
    # MLP layer 1 with the feature concat removed: split weight, two dots.
    hdn = jnp.maximum(
        mdot(h1, w1h_ref[...]) + mdot(price_feat, w1p_ref[...]) + bm1_ref[...], 0.0)
    hdn = jnp.maximum(mdot(hdn, w2_ref[...]) + bm2_ref[...], 0.0)

    # Fused mu / log_std heads.
    heads = mdot(hdn, whead_ref[...]) + bhead_ref[...]   # (B, 2A)
    mu = heads[:, :A]
    log_std = jnp.clip(heads[:, A:2 * A], LOG_STD_MIN, LOG_STD_MAX)
    std = jnp.exp(log_std)

    eps = eps_ref[...]
    pi_action = mu + std * eps   # rsample; pass eps = 0 for deterministic=True

    # Normal(mu, std).log_prob(pi_action).sum(-1); (a - mu)/std == eps.
    logp = jnp.sum(-0.5 * eps * eps - log_std - 0.5 * jnp.log(2.0 * jnp.pi),
                   axis=-1, keepdims=True)
    # logp -= sum(2*(log2 - a - softplus(-2a)))  (stable softplus form).
    z2 = -2.0 * pi_action
    softplus = jnp.maximum(z2, 0.0) + jnp.log1p(jnp.exp(-jnp.abs(z2)))
    logp = logp - jnp.sum(2.0 * (jnp.log(2.0) - pi_action - softplus),
                          axis=-1, keepdims=True)

    squashed = jnp.tanh(pi_action)
    pi_scaled = act_low + 0.5 * (squashed + 1.0) * (act_high - act_low)

    # Single lane-dense packed store: lanes 0:A = pi, lane A = logp, rest = 0.
    pad_w = out_ref.shape[1] - (A + 1)
    parts = [pi_scaled, logp]
    if pad_w > 0:
        parts.append(jnp.zeros((B, pad_w), jnp.float32))
    out_ref[...] = jnp.concatenate(parts, axis=-1)


def _prep_fused_params(params, weight_dtype=jnp.float32):
    """Trace-time weight fusion: gate-column permutation [i,f,g,o]->[i,f,o,g],
    bias sums, MLP/head splits & concats, optional bf16 cast (matrices only)."""
    H = params["whh0"].shape[0]
    wd = weight_dtype

    def reorder(w):  # permute gate columns [i, f, g, o] -> [i, f, o, g]
        return jnp.concatenate(
            [w[..., :2 * H], w[..., 3 * H:4 * H], w[..., 2 * H:3 * H]], axis=-1)

    return {
        # wrapper-only (layer-0 input projection is hoisted out of the kernel)
        "wih0": reorder(params["wih0"]).astype(wd),
        "b0": reorder(params["bih0"] + params["bhh0"]),
        # kernel weights
        "whh0": reorder(params["whh0"]).astype(wd),
        "wih1": reorder(params["wih1"]).astype(wd),
        "whh1": reorder(params["whh1"]).astype(wd),
        "blstm1": reorder(params["bih1"] + params["bhh1"]),
        "wp": params["wp"].astype(wd), "bp": params["bp"],
        "w1h": params["w1"][:H].astype(wd),      # feat = [h1 | price_feat]
        "w1p": params["w1"][H:].astype(wd),
        "bm1": params["b1"],
        "w2": params["w2"].astype(wd), "bm2": params["b2"],
        "whead": jnp.concatenate([params["wmu"], params["wls"]], axis=1).astype(wd),
        "bhead": jnp.concatenate([params["bmu"], params["bls"]], axis=1),
    }


def _num_tensorcores():
    # v7x exposes 2 TensorCores per chip; v5e/v6e have 1.  Fall back to 1 if
    # the runtime does not expose a core count.
    try:
        dev = jax.devices()[0]
    except Exception:
        return 1
    for attr in ("num_cores", "core_count"):
        n = getattr(dev, attr, None)
        if isinstance(n, int) and n > 0:
            return n
    return 1


def _pick_batch_block(B, n_cores):
    if n_cores > 1 and B >= 16:
        # Multi-TC chip (v7x): split the batch across cores, rounded up to a
        # sublane multiple.  Non-divisible batches are padded by the wrapper.
        bt = -(-B // (2 * n_cores))
        return -(-bt // 8) * 8
    # Single-TC chips (v5e/v6e): extra grid steps are pure ~0.35us overhead,
    # keep one fully-resident block unless the batch is huge (bound VMEM).
    if B > 1024:
        return 512
    return B


def actor_lstm_forward(params, x_seq, price, eps, act_limit,
                       weight_dtype=jnp.float32):
    """x_seq: (B, T, state_dim) batch-first; price: (B, price_dim); eps: (B, A).
    Pass eps = 0 for the deterministic=True path.  weight_dtype=jnp.bfloat16
    halves weight VMEM (recommended on v7x for large hidden sizes)."""
    B, T, D = x_seq.shape
    P = price.shape[1]
    A = params["wmu"].shape[1]
    H = params["whh0"].shape[0]

    fp = _prep_fused_params(params, weight_dtype)

    # Layer-0 input projections hoisted off the recurrent chain: one
    # (T*B, D) @ (D, 4H) matmul at trace time, bias folded in, fed time-major.
    x_tm = jnp.transpose(x_seq, (1, 0, 2)).astype(jnp.float32)      # (T, B, D)
    proj = (jnp.dot(x_tm.astype(fp["wih0"].dtype), fp["wih0"],
                    preferred_element_type=jnp.float32) + fp["b0"])  # (T, B, 4H)
    price_f = price.astype(jnp.float32)
    eps_f = eps.astype(jnp.float32)

    n_cores = _num_tensorcores()
    Bt = min(_pick_batch_block(B, n_cores), B)
    nb = -(-B // Bt)
    Bpad = nb * Bt
    if Bpad != B:  # pad-to-tile fallback for non-divisible batches
        pb = Bpad - B
        proj = jnp.pad(proj, ((0, 0), (0, pb), (0, 0)))
        price_f = jnp.pad(price_f, ((0, pb), (0, 0)))
        eps_f = jnp.pad(eps_f, ((0, pb), (0, 0)))

    OUT_W = max(128, -(-(A + 1) // 128) * 128)   # lane-dense packed output width
    bounds = jnp.asarray(act_limit, dtype=jnp.float32).reshape(2)

    weight_args = (fp["whh0"], fp["wih1"], fp["whh1"], fp["blstm1"],
                   fp["wp"], fp["bp"],
                   fp["w1h"], fp["w1p"], fp["bm1"],
                   fp["w2"], fp["bm2"],
                   fp["whead"], fp["bhead"])

    def full(arr):
        ndim = arr.ndim
        return pl.BlockSpec(arr.shape, lambda b: (0,) * ndim)

    in_specs = ([pl.BlockSpec(memory_space=pltpu.MemorySpace.SMEM),      # act bounds
                 pl.BlockSpec((T, Bt, 4 * H), lambda b: (0, b, 0)),      # projections
                 pl.BlockSpec((Bt, P), lambda b: (b, 0)),                # price
                 pl.BlockSpec((Bt, A), lambda b: (b, 0))]                # eps
                + [full(w) for w in weight_args])
    out_spec = pl.BlockSpec((Bt, OUT_W), lambda b: (b, 0))

    # Explicit VMEM budget from actual buffer sizes (x2 double-buffering) with
    # headroom, clamped to 64 MiB so the request is valid on every generation.
    block_bytes = (math.prod((T, Bt, 4 * H)) * 4
                   + math.prod((Bt, P)) * 4
                   + math.prod((Bt, A)) * 4
                   + math.prod((Bt, OUT_W)) * 4
                   + sum(int(w.size) * w.dtype.itemsize for w in weight_args))
    vmem_limit = int(min(max(2 * block_bytes + (8 << 20), 32 << 20), 64 << 20))

    packed = pl.pallas_call(
        actor_lstm_kernel,
        out_shape=jax.ShapeDtypeStruct((Bpad, OUT_W), jnp.float32),
        grid_spec=pltpu.PrefetchScalarGridSpec(
            num_scalar_prefetch=0,
            grid=(nb,),
            in_specs=in_specs,
            out_specs=out_spec,
        ),
        # TODO(synk): consider pltpu.CORE_PARALLEL on the batch axis if plain
        # "parallel" does not split across v7x TensorCores in practice.
        compiler_params=pltpu.CompilerParams(
            dimension_semantics=("parallel",),
            vmem_limit_bytes=vmem_limit),
    )(bounds, proj, price_f, eps_f, *weight_args)

    return packed[:B, :A], packed[:B, A]


def _reference_forward(params, x_seq, price, eps, act_limit):
    """Pure-JAX reference of the same math for a correctness check."""
    H = params["whh0"].shape[0]

    def cell(x_t, h, c, wih, whh, b):
        g = x_t @ wih + h @ whh + b
        i, f, gg, o = (jax.nn.sigmoid(g[:, :H]), jax.nn.sigmoid(g[:, H:2 * H]),
                       jnp.tanh(g[:, 2 * H:3 * H]), jax.nn.sigmoid(g[:, 3 * H:]))
        c = f * c + i * gg
        return o * jnp.tanh(c), c

    B = x_seq.shape[0]
    h0 = c0 = h1 = c1 = jnp.zeros((B, H), jnp.float32)
    for t in range(x_seq.shape[1]):
        h0, c0 = cell(x_seq[:, t, :], h0, c0, params["wih0"], params["whh0"],
                      params["bih0"] + params["bhh0"])
        h1, c1 = cell(h0, h1, c1, params["wih1"], params["whh1"],
                      params["bih1"] + params["bhh1"])
    pf = price @ params["wp"] + params["bp"]
    feat = jnp.concatenate([h1, pf], axis=-1)
    hdn = jax.nn.relu(feat @ params["w1"] + params["b1"])
    hdn = jax.nn.relu(hdn @ params["w2"] + params["b2"])
    mu = hdn @ params["wmu"] + params["bmu"]
    log_std = jnp.clip(hdn @ params["wls"] + params["bls"], LOG_STD_MIN, LOG_STD_MAX)
    std = jnp.exp(log_std)
    a = mu + std * eps
    logp = jnp.sum(-0.5 * eps ** 2 - log_std - 0.5 * jnp.log(2 * jnp.pi), axis=-1)
    logp -= jnp.sum(2.0 * (jnp.log(2.0) - a - jax.nn.softplus(-2.0 * a)), axis=-1)
    pi = jnp.tanh(a)
    pi = act_limit[0] + 0.5 * (pi + 1.0) * (act_limit[1] - act_limit[0])
    return pi, logp


def init_params(key, state_dim, price_dim, act_dim, hidden_sizes):
    # Matches the module with hidden_sizes of length 2 (2-layer MLP head).
    H, H1, H2 = hidden_sizes[0], hidden_sizes[0], hidden_sizes[-1]
    shapes = {
        "wih0": (state_dim, 4 * H), "whh0": (H, 4 * H),
        "bih0": (1, 4 * H), "bhh0": (1, 4 * H),
        "wih1": (H, 4 * H), "whh1": (H, 4 * H),
        "bih1": (1, 4 * H), "bhh1": (1, 4 * H),
        "wp": (price_dim, H), "bp": (1, H),
        "w1": (2 * H, H1), "b1": (1, H1),
        "w2": (H1, H2), "b2": (1, H2),
        "wmu": (H2, act_dim), "bmu": (1, act_dim),
        "wls": (H2, act_dim), "bls": (1, act_dim),
    }
    params = {}
    for name, shape in sorted(shapes.items()):
        key, sub = jax.random.split(key)
        params[name] = (0.1 * jax.random.normal(sub, shape)).astype(jnp.float32)
    return params


if __name__ == "__main__":
    # Small shapes consistent with the module's forward (obs['net'], obs['price']).
    B, T = 2, 8
    state_dim, price_dim, act_dim = 12, 6, 4
    hidden_sizes = [32, 32]
    act_limit = (-1.0, 2.0)

    root = jax.random.PRNGKey(0)
    k_param, k_x, k_p, k_eps = jax.random.split(root, 4)

    params = init_params(k_param, state_dim, price_dim, act_dim, hidden_sizes)
    x_seq = jax.random.normal(k_x, (B, T, state_dim), dtype=jnp.float32)   # obs['net']
    price = jax.random.normal(k_p, (B, price_dim), dtype=jnp.float32)      # obs['price']
    eps = jax.random.normal(k_eps, (B, act_dim), dtype=jnp.float32)        # rsample noise

    pi, logp = actor_lstm_forward(params, x_seq, price, eps, act_limit)
    jax.block_until_ready((pi, logp))

    pi_ref, logp_ref = _reference_forward(params, x_seq, price, eps, act_limit)
    # Tolerance covers XLA-vs-Mosaic f32 matmul pass-count/rounding differences
    # (both may run f32 dots as bf16 MXU passes); semantic bugs are far larger.
    assert pi.shape == (B, act_dim) and logp.shape == (B,)
    assert jnp.allclose(pi, pi_ref, rtol=3e-2, atol=3e-2), "pi_action mismatch"
    assert jnp.allclose(logp, logp_ref, rtol=3e-2, atol=3e-2), "logp mismatch"

    # bf16-weight variant (v7x VMEM / MXU-throughput path): must run clean.
    pi_bf, logp_bf = actor_lstm_forward(params, x_seq, price, eps, act_limit,
                                        weight_dtype=jnp.bfloat16)
    jax.block_until_ready((pi_bf, logp_bf))
    assert bool(jnp.all(jnp.isfinite(pi_bf))) and bool(jnp.all(jnp.isfinite(logp_bf)))

    print("KERNEL_OK")
</pallas_src>

<mosaic_0001>
module attributes {stable_mosaic.version = 11 : i64} {
  func.func @actor_lstm_kernel(%arg0: i32, %arg1: memref<2xf32, #tpu.memory_space<smem>>, %arg2: memref<8x2x128xf32, #tpu.memory_space<vmem>>, %arg3: memref<2x6xf32, #tpu.memory_space<vmem>>, %arg4: memref<2x4xf32, #tpu.memory_space<vmem>>, %arg5: memref<32x128xf32, #tpu.memory_space<vmem>>, %arg6: memref<32x128xf32, #tpu.memory_space<vmem>>, %arg7: memref<32x128xf32, #tpu.memory_space<vmem>>, %arg8: memref<1x128xf32, #tpu.memory_space<vmem>>, %arg9: memref<6x32xf32, #tpu.memory_space<vmem>>, %arg10: memref<1x32xf32, #tpu.memory_space<vmem>>, %arg11: memref<32x32xf32, #tpu.memory_space<vmem>>, %arg12: memref<32x32xf32, #tpu.memory_space<vmem>>, %arg13: memref<1x32xf32, #tpu.memory_space<vmem>>, %arg14: memref<32x32xf32, #tpu.memory_space<vmem>>, %arg15: memref<1x32xf32, #tpu.memory_space<vmem>>, %arg16: memref<32x8xf32, #tpu.memory_space<vmem>>, %arg17: memref<1x8xf32, #tpu.memory_space<vmem>>, %arg18: memref<2x128xf32, #tpu.memory_space<vmem>>) attributes {dimension_semantics = [#tpu.dimension_semantics<parallel>], iteration_bounds = array<i64: 1>, scalar_prefetch = 0 : i64, scratch_operands = 0 : i64, tpu.core_type = #tpu.core_type<tc>, window_params = [{transform_indices = @transform_0, window_bounds = array<i64: 2>}, {transform_indices = @transform_1, window_bounds = array<i64: 8, 2, 128>}, {transform_indices = @transform_2, window_bounds = array<i64: 2, 6>}, {transform_indices = @transform_3, window_bounds = array<i64: 2, 4>}, {pipeline_mode = #tpu.pipeline_mode<synchronous>, transform_indices = @transform_4, window_bounds = array<i64: 32, 128>}, {pipeline_mode = #tpu.pipeline_mode<synchronous>, transform_indices = @transform_5, window_bounds = array<i64: 32, 128>}, {pipeline_mode = #tpu.pipeline_mode<synchronous>, transform_indices = @transform_6, window_bounds = array<i64: 32, 128>}, {pipeline_mode = #tpu.pipeline_mode<synchronous>, transform_indices = @transform_7, window_bounds = array<i64: 1, 128>}, {pipeline_mode = #tpu.pipeline_mode<synchronous>, transform_indices = @transform_8, window_bounds = array<i64: 6, 32>}, {pipeline_mode = #tpu.pipeline_mode<synchronous>, transform_indices = @transform_9, window_bounds = array<i64: 1, 32>}, {pipeline_mode = #tpu.pipeline_mode<synchronous>, transform_indices = @transform_10, window_bounds = array<i64: 32, 32>}, {pipeline_mode = #tpu.pipeline_mode<synchronous>, transform_indices = @transform_11, window_bounds = array<i64: 32, 32>}, {pipeline_mode = #tpu.pipeline_mode<synchronous>, transform_indices = @transform_12, window_bounds = array<i64: 1, 32>}, {pipeline_mode = #tpu.pipeline_mode<synchronous>, transform_indices = @transform_13, window_bounds = array<i64: 32, 32>}, {pipeline_mode = #tpu.pipeline_mode<synchronous>, transform_indices = @transform_14, window_bounds = array<i64: 1, 32>}, {pipeline_mode = #tpu.pipeline_mode<synchronous>, transform_indices = @transform_15, window_bounds = array<i64: 32, 8>}, {pipeline_mode = #tpu.pipeline_mode<synchronous>, transform_indices = @transform_16, window_bounds = array<i64: 1, 8>}, {transform_indices = @transform_17, window_bounds = array<i64: 2, 128>}]} {
    %c0 = arith.constant 0 : index
    %0 = memref.load %arg1[%c0] : memref<2xf32, #tpu.memory_space<smem>>
    %c1 = arith.constant 1 : index
    %1 = memref.load %arg1[%c1] : memref<2xf32, #tpu.memory_space<smem>>
    %c0_0 = arith.constant 0 : index
    %c0_1 = arith.constant 0 : index
    %2 = vector.load %arg5[%c0_0, %c0_1] : memref<32x128xf32, #tpu.memory_space<vmem>>, vector<32x128xf32>
    %c0_2 = arith.constant 0 : index
    %c0_3 = arith.constant 0 : index
    %3 = vector.load %arg6[%c0_2, %c0_3] : memref<32x128xf32, #tpu.memory_space<vmem>>, vector<32x128xf32>
    %c0_4 = arith.constant 0 : index
    %c0_5 = arith.constant 0 : index
    %4 = vector.load %arg7[%c0_4, %c0_5] : memref<32x128xf32, #tpu.memory_space<vmem>>, vector<32x128xf32>
    %c0_6 = arith.constant 0 : index
    %c0_7 = arith.constant 0 : index
    %5 = vector.load %arg8[%c0_6, %c0_7] : memref<1x128xf32, #tpu.memory_space<vmem>>, vector<1x128xf32>
    %cst = arith.constant 0.000000e+00 : f32
    %6 = vector.broadcast %cst : f32 to vector<2x32xf32>
    %c0_8 = arith.constant 0 : index
    %c0_9 = arith.constant 0 : index
    %c0_10 = arith.constant 0 : index
    %7 = vector.load %arg2[%c0_8, %c0_9, %c0_10] : memref<8x2x128xf32, #tpu.memory_space<vmem>>, vector<1x2x128xf32>
    %8 = vector.shape_cast %7 : vector<1x2x128xf32> to vector<2x128xf32>
    %cst_11 = arith.constant dense<0.000000e+00> : vector<2x128xf32>
    %9 = tpu.matmul %6, %2, %cst_11 {dimension_numbers = #tpu.dot_dimension_numbers<[1], [0], [0], [1], [0, 0, 1, 1], [], []>} : vector<2x32xf32>, vector<32x128xf32>, vector<2x128xf32> -> vector<2x128xf32>
    %10 = arith.addf %8, %9 : vector<2x128xf32>
    %11 = vector.extract_strided_slice %10 {offsets = [0, 0], sizes = [2, 96], strides = [1, 1]} : vector<2x128xf32> to vector<2x96xf32>
    %cst_12 = arith.constant 5.000000e-01 : f32
    %12 = vector.broadcast %cst_12 : f32 to vector<2x96xf32>
    %13 = arith.mulf %12, %11 : vector<2x96xf32>
    %14 = math.tanh %13 : vector<2x96xf32>
    %cst_13 = arith.constant 1.000000e+00 : f32
    %15 = vector.broadcast %cst_13 : f32 to vector<2x96xf32>
    %16 = arith.addf %14, %15 : vector<2x96xf32>
    %cst_14 = arith.constant 5.000000e-01 : f32
    %17 = vector.broadcast %cst_14 : f32 to vector<2x96xf32>
    %18 = arith.mulf %17, %16 : vector<2x96xf32>
    %19 = vector.extract_strided_slice %10 {offsets = [0, 96], sizes = [2, 32], strides = [1, 1]} : vector<2x128xf32> to vector<2x32xf32>
    %20 = math.tanh %19 : vector<2x32xf32>
    %21 = vector.extract_strided_slice %18 {offsets = [0, 0], sizes = [2, 32], strides = [1, 1]} : vector<2x96xf32> to vector<2x32xf32>
    %22 = vector.extract_strided_slice %18 {offsets = [0, 32], sizes = [2, 32], strides = [1, 1]} : vector<2x96xf32> to vector<2x32xf32>
    %23 = vector.extract_strided_slice %18 {offsets = [0, 64], sizes = [2, 32], strides = [1, 1]} : vector<2x96xf32> to vector<2x32xf32>
    %24 = arith.mulf %22, %6 : vector<2x32xf32>
    %25 = arith.mulf %21, %20 : vector<2x32xf32>
    %26 = arith.addf %24, %25 : vector<2x32xf32>
    %27 = math.tanh %26 : vector<2x32xf32>
    %28 = arith.mulf %23, %27 : vector<2x32xf32>
    %cst_15 = arith.constant dense<0.000000e+00> : vector<2x128xf32>
    %29 = tpu.matmul %28, %3, %cst_15 {dimension_numbers = #tpu.dot_dimension_numbers<[1], [0], [0], [1], [0, 0, 1, 1], [], []>} : vector<2x32xf32>, vector<32x128xf32>, vector<2x128xf32> -> vector<2x128xf32>
    %cst_16 = arith.constant dense<0.000000e+00> : vector<2x128xf32>
    %30 = tpu.matmul %6, %4, %cst_16 {dimension_numbers = #tpu.dot_dimension_numbers<[1], [0], [0], [1], [0, 0, 1, 1], [], []>} : vector<2x32xf32>, vector<32x128xf32>, vector<2x128xf32> -> vector<2x128xf32>
    %31 = arith.addf %29, %30 : vector<2x128xf32>
    %32 = vector.broadcast %5 : vector<1x128xf32> to vector<2x128xf32>
    %33 = arith.addf %31, %32 : vector<2x128xf32>
    %34 = vector.extract_strided_slice %33 {offsets = [0, 0], sizes = [2, 96], strides = [1, 1]} : vector<2x128xf32> to vector<2x96xf32>
    %cst_17 = arith.constant 5.000000e-01 : f32
    %35 = vector.broadcast %cst_17 : f32 to vector<2x96xf32>
    %36 = arith.mulf %35, %34 : vector<2x96xf32>
    %37 = math.tanh %36 : vector<2x96xf32>
    %cst_18 = arith.constant 1.000000e+00 : f32
    %38 = vector.broadcast %cst_18 : f32 to vector<2x96xf32>
    %39 = arith.addf %37, %38 : vector<2x96xf32>
    %cst_19 = arith.constant 5.000000e-01 : f32
    %40 = vector.broadcast %cst_19 : f32 to vector<2x96xf32>
    %41 = arith.mulf %40, %39 : vector<2x96xf32>
    %42 = vector.extract_strided_slice %33 {offsets = [0, 96], sizes = [2, 32], strides = [1, 1]} : vector<2x128xf32> to vector<2x32xf32>
    %43 = math.tanh %42 : vector<2x32xf32>
    %44 = vector.extract_strided_slice %41 {offsets = [0, 0], sizes = [2, 32], strides = [1, 1]} : vector<2x96xf32> to vector<2x32xf32>
    %45 = vector.extract_strided_slice %41 {offsets = [0, 32], sizes = [2, 32], strides = [1, 1]} : vector<2x96xf32> to vector<2x32xf32>
    %46 = vector.extract_strided_slice %41 {offsets = [0, 64], sizes = [2, 32], strides = [1, 1]} : vector<2x96xf32> to vector<2x32xf32>
    %47 = arith.mulf %45, %6 : vector<2x32xf32>
    %48 = arith.mulf %44, %43 : vector<2x32xf32>
    %49 = arith.addf %47, %48 : vector<2x32xf32>
    %50 = math.tanh %49 : vector<2x32xf32>
    %51 = arith.mulf %46, %50 : vector<2x32xf32>
    %c1_20 = arith.constant 1 : index
    %c0_21 = arith.constant 0 : index
    %c0_22 = arith.constant 0 : index
    %52 = vector.load %arg2[%c1_20, %c0_21, %c0_22] : memref<8x2x128xf32, #tpu.memory_space<vmem>>, vector<1x2x128xf32>
    %53 = vector.shape_cast %52 : vector<1x2x128xf32> to vector<2x128xf32>
    %cst_23 = arith.constant dense<0.000000e+00> : vector<2x128xf32>
    %54 = tpu.matmul %28, %2, %cst_23 {dimension_numbers = #tpu.dot_dimension_numbers<[1], [0], [0], [1], [0, 0, 1, 1], [], []>} : vector<2x32xf32>, vector<32x128xf32>, vector<2x128xf32> -> vector<2x128xf32>
    %55 = arith.addf %53, %54 : vector<2x128xf32>
    %56 = vector.extract_strided_slice %55 {offsets = [0, 0], sizes = [2, 96], strides = [1, 1]} : vector<2x128xf32> to vector<2x96xf32>
    %cst_24 = arith.constant 5.000000e-01 : f32
    %57 = vector.broadcast %cst_24 : f32 to vector<2x96xf32>
    %58 = arith.mulf %57, %56 : vector<2x96xf32>
    %59 = math.tanh %58 : vector<2x96xf32>
    %cst_25 = arith.constant 1.000000e+00 : f32
    %60 = vector.broadcast %cst_25 : f32 to vector<2x96xf32>
    %61 = arith.addf %59, %60 : vector<2x96xf32>
    %cst_26 = arith.constant 5.000000e-01 : f32
    %62 = vector.broadcast %cst_26 : f32 to vector<2x96xf32>
    %63 = arith.mulf %62, %61 : vector<2x96xf32>
    %64 = vector.extract_strided_slice %55 {offsets = [0, 96], sizes = [2, 32], strides = [1, 1]} : vector<2x128xf32> to vector<2x32xf32>
    %65 = math.tanh %64 : vector<2x32xf32>
    %66 = vector.extract_strided_slice %63 {offsets = [0, 0], sizes = [2, 32], strides = [1, 1]} : vector<2x96xf32> to vector<2x32xf32>
    %67 = vector.extract_strided_slice %63 {offsets = [0, 32], sizes = [2, 32], strides = [1, 1]} : vector<2x96xf32> to vector<2x32xf32>
    %68 = vector.extract_strided_slice %63 {offsets = [0, 64], sizes = [2, 32], strides = [1, 1]} : vector<2x96xf32> to vector<2x32xf32>
    %69 = arith.mulf %67, %26 : vector<2x32xf32>
    %70 = arith.mulf %66, %65 : vector<2x32xf32>
    %71 = arith.addf %69, %70 : vector<2x32xf32>
    %72 = math.tanh %71 : vector<2x32xf32>
    %73 = arith.mulf %68, %72 : vector<2x32xf32>
    %cst_27 = arith.constant dense<0.000000e+00> : vector<2x128xf32>
    %74 = tpu.matmul %73, %3, %cst_27 {dimension_numbers = #tpu.dot_dimension_numbers<[1], [0], [0], [1], [0, 0, 1, 1], [], []>} : vector<2x32xf32>, vector<32x128xf32>, vector<2x128xf32> -> vector<2x128xf32>
    %cst_28 = arith.constant dense<0.000000e+00> : vector<2x128xf32>
    %75 = tpu.matmul %51, %4, %cst_28 {dimension_numbers = #tpu.dot_dimension_numbers<[1], [0], [0], [1], [0, 0, 1, 1], [], []>} : vector<2x32xf32>, vector<32x128xf32>, vector<2x128xf32> -> vector<2x128xf32>
    %76 = arith.addf %74, %75 : vector<2x128xf32>
    %77 = vector.broadcast %5 : vector<1x128xf32> to vector<2x128xf32>
    %78 = arith.addf %76, %77 : vector<2x128xf32>
    %79 = vector.extract_strided_slice %78 {offsets = [0, 0], sizes = [2, 96], strides = [1, 1]} : vector<2x128xf32> to vector<2x96xf32>
    %cst_29 = arith.constant 5.000000e-01 : f32
    %80 = vector.broadcast %cst_29 : f32 to vector<2x96xf32>
    %81 = arith.mulf %80, %79 : vector<2x96xf32>
    %82 = math.tanh %81 : vector<2x96xf32>
    %cst_30 = arith.constant 1.000000e+00 : f32
    %83 = vector.broadcast %cst_30 : f32 to vector<2x96xf32>
    %84 = arith.addf %82, %83 : vector<2x96xf32>
    %cst_31 = arith.constant 5.000000e-01 : f32
    %85 = vector.broadcast %cst_31 : f32 to vector<2x96xf32>
    %86 = arith.mulf %85, %84 : vector<2x96xf32>
    %87 = vector.extract_strided_slice %78 {offsets = [0, 96], sizes = [2, 32], strides = [1, 1]} : vector<2x128xf32> to vector<2x32xf32>
    %88 = math.tanh %87 : vector<2x32xf32>
    %89 = vector.extract_strided_slice %86 {offsets = [0, 0], sizes = [2, 32], strides = [1, 1]} : vector<2x96xf32> to vector<2x32xf32>
    %90 = vector.extract_strided_slice %86 {offsets = [0, 32], sizes = [2, 32], strides = [1, 1]} : vector<2x96xf32> to vector<2x32xf32>
    %91 = vector.extract_strided_slice %86 {offsets = [0, 64], sizes = [2, 32], strides = [1, 1]} : vector<2x96xf32> to vector<2x32xf32>
    %92 = arith.mulf %90, %49 : vector<2x32xf32>
    %93 = arith.mulf %89, %88 : vector<2x32xf32>
    %94 = arith.addf %92, %93 : vector<2x32xf32>
    %95 = math.tanh %94 : vector<2x32xf32>
    %96 = arith.mulf %91, %95 : vector<2x32xf32>
    %c2 = arith.constant 2 : index
    %c0_32 = arith.constant 0 : index
    %c0_33 = arith.constant 0 : index
    %97 = vector.load %arg2[%c2, %c0_32, %c0_33] : memref<8x2x128xf32, #tpu.memory_space<vmem>>, vector<1x2x128xf32>
    %98 = vector.shape_cast %97 : vector<1x2x128xf32> to vector<2x128xf32>
    %cst_34 = arith.constant dense<0.000000e+00> : vector<2x128xf32>
    %99 = tpu.matmul %73, %2, %cst_34 {dimension_numbers = #tpu.dot_dimension_numbers<[1], [0], [0], [1], [0, 0, 1, 1], [], []>} : vector<2x32xf32>, vector<32x128xf32>, vector<2x128xf32> -> vector<2x128xf32>
    %100 = arith.addf %98, %99 : vector<2x128xf32>
    %101 = vector.extract_strided_slice %100 {offsets = [0, 0], sizes = [2, 96], strides = [1, 1]} : vector<2x128xf32> to vector<2x96xf32>
    %cst_35 = arith.constant 5.000000e-01 : f32
    %102 = vector.broadcast %cst_35 : f32 to vector<2x96xf32>
    %103 = arith.mulf %102, %101 : vector<2x96xf32>
    %104 = math.tanh %103 : vector<2x96xf32>
    %cst_36 = arith.constant 1.000000e+00 : f32
    %105 = vector.broadcast %cst_36 : f32 to vector<2x96xf32>
    %106 = arith.addf %104, %105 : vector<2x96xf32>
    %cst_37 = arith.constant 5.000000e-01 : f32
    %107 = vector.broadcast %cst_37 : f32 to vector<2x96xf32>
    %108 = arith.mulf %107, %106 : vector<2x96xf32>
    %109 = vector.extract_strided_slice %100 {offsets = [0, 96], sizes = [2, 32], strides = [1, 1]} : vector<2x128xf32> to vector<2x32xf32>
    %110 = math.tanh %109 : vector<2x32xf32>
    %111 = vector.extract_strided_slice %108 {offsets = [0, 0], sizes = [2, 32], strides = [1, 1]} : vector<2x96xf32> to vector<2x32xf32>
    %112 = vector.extract_strided_slice %108 {offsets = [0, 32], sizes = [2, 32], strides = [1, 1]} : vector<2x96xf32> to vector<2x32xf32>
    %113 = vector.extract_strided_slice %108 {offsets = [0, 64], sizes = [2, 32], strides = [1, 1]} : vector<2x96xf32> to vector<2x32xf32>
    %114 = arith.mulf %112, %71 : vector<2x32xf32>
    %115 = arith.mulf %111, %110 : vector<2x32xf32>
    %116 = arith.addf %114, %115 : vector<2x32xf32>
    %117 = math.tanh %116 : vector<2x32xf32>
    %118 = arith.mulf %113, %117 : vector<2x32xf32>
    %cst_38 = arith.constant dense<0.000000e+00> : vector<2x128xf32>
    %119 = tpu.matmul %118, %3, %cst_38 {dimension_numbers = #tpu.dot_dimension_numbers<[1], [0], [0], [1], [0, 0, 1, 1], [], []>} : vector<2x32xf32>, vector<32x128xf32>, vector<2x128xf32> -> vector<2x128xf32>
    %cst_39 = arith.constant dense<0.000000e+00> : vector<2x128xf32>
    %120 = tpu.matmul %96, %4, %cst_39 {dimension_numbers = #tpu.dot_dimension_numbers<[1], [0], [0], [1], [0, 0, 1, 1], [], []>} : vector<2x32xf32>, vector<32x128xf32>, vector<2x128xf32> -> vector<2x128xf32>
    %121 = arith.addf %119, %120 : vector<2x128xf32>
    %122 = vector.broadcast %5 : vector<1x128xf32> to vector<2x128xf32>
    %123 = arith.addf %121, %122 : vector<2x128xf32>
    %124 = vector.extract_strided_slice %123 {offsets = [0, 0], sizes = [2, 96], strides = [1, 1]} : vector<2x128xf32> to vector<2x96xf32>
    %cst_40 = arith.constant 5.000000e-01 : f32
    %125 = vector.broadcast %cst_40 : f32 to vector<2x96xf32>
    %126 = arith.mulf %125, %124 : vector<2x96xf32>
    %127 = math.tanh %126 : vector<2x96xf32>
    %cst_41 = arith.constant 1.000000e+00 : f32
    %128 = vector.broadcast %cst_41 : f32 to vector<2x96xf32>
    %129 = arith.addf %127, %128 : vector<2x96xf32>
    %cst_42 = arith.constant 5.000000e-01 : f32
    %130 = vector.broadcast %cst_42 : f32 to vector<2x96xf32>
    %131 = arith.mulf %130, %129 : vector<2x96xf32>
    %132 = vector.extract_strided_slice %123 {offsets = [0, 96], sizes = [2, 32], strides = [1, 1]} : vector<2x128xf32> to vector<2x32xf32>
    %133 = math.tanh %132 : vector<2x32xf32>
    %134 = vector.extract_strided_slice %131 {offsets = [0, 0], sizes = [2, 32], strides = [1, 1]} : vector<2x96xf32> to vector<2x32xf32>
    %135 = vector.extract_strided_slice %131 {offsets = [0, 32], sizes = [2, 32], strides = [1, 1]} : vector<2x96xf32> to vector<2x32xf32>
    %136 = vector.extract_strided_slice %131 {offsets = [0, 64], sizes = [2, 32], strides = [1, 1]} : vector<2x96xf32> to vector<2x32xf32>
    %137 = arith.mulf %135, %94 : vector<2x32xf32>
    %138 = arith.mulf %134, %133 : vector<2x32xf32>
    %139 = arith.addf %137, %138 : vector<2x32xf32>
    %140 = math.tanh %139 : vector<2x32xf32>
    %141 = arith.mulf %136, %140 : vector<2x32xf32>
    %c3 = arith.constant 3 : index
    %c0_43 = arith.constant 0 : index
    %c0_44 = arith.constant 0 : index
    %142 = vector.load %arg2[%c3, %c0_43, %c0_44] : memref<8x2x128xf32, #tpu.memory_space<vmem>>, vector<1x2x128xf32>
    %143 = vector.shape_cast %142 : vector<1x2x128xf32> to vector<2x128xf32>
    %cst_45 = arith.constant dense<0.000000e+00> : vector<2x128xf32>
    %144 = tpu.matmul %118, %2, %cst_45 {dimension_numbers = #tpu.dot_dimension_numbers<[1], [0], [0], [1], [0, 0, 1, 1], [], []>} : vector<2x32xf32>, vector<32x128xf32>, vector<2x128xf32> -> vector<2x128xf32>
    %145 = arith.addf %143, %144 : vector<2x128xf32>
    %146 = vector.extract_strided_slice %145 {offsets = [0, 0], sizes = [2, 96], strides = [1, 1]} : vector<2x128xf32> to vector<2x96xf32>
    %cst_46 = arith.constant 5.000000e-01 : f32
    %147 = vector.broadcast %cst_46 : f32 to vector<2x96xf32>
    %148 = arith.mulf %147, %146 : vector<2x96xf32>
    %149 = math.tanh %148 : vector<2x96xf32>
    %cst_47 = arith.constant 1.000000e+00 : f32
    %150 = vector.broadcast %cst_47 : f32 to vector<2x96xf32>
    %151 = arith.addf %149, %150 : vector<2x96xf32>
    %cst_48 = arith.constant 5.000000e-01 : f32
    %152 = vector.broadcast %cst_48 : f32 to vector<2x96xf32>
    %153 = arith.mulf %152, %151 : vector<2x96xf32>
    %154 = vector.extract_strided_slice %145 {offsets = [0, 96], sizes = [2, 32], strides = [1, 1]} : vector<2x128xf32> to vector<2x32xf32>
    %155 = math.tanh %154 : vector<2x32xf32>
    %156 = vector.extract_strided_slice %153 {offsets = [0, 0], sizes = [2, 32], strides = [1, 1]} : vector<2x96xf32> to vector<2x32xf32>
    %157 = vector.extract_strided_slice %153 {offsets = [0, 32], sizes = [2, 32], strides = [1, 1]} : vector<2x96xf32> to vector<2x32xf32>
    %158 = vector.extract_strided_slice %153 {offsets = [0, 64], sizes = [2, 32], strides = [1, 1]} : vector<2x96xf32> to vector<2x32xf32>
    %159 = arith.mulf %157, %116 : vector<2x32xf32>
    %160 = arith.mulf %156, %155 : vector<2x32xf32>
    %161 = arith.addf %159, %160 : vector<2x32xf32>
    %162 = math.tanh %161 : vector<2x32xf32>
    %163 = arith.mulf %158, %162 : vector<2x32xf32>
    %cst_49 = arith.constant dense<0.000000e+00> : vector<2x128xf32>
    %164 = tpu.matmul %163, %3, %cst_49 {dimension_numbers = #tpu.dot_dimension_numbers<[1], [0], [0], [1], [0, 0, 1, 1], [], []>} : vector<2x32xf32>, vector<32x128xf32>, vector<2x128xf32> -> vector<2x128xf32>
    %cst_50 = arith.constant dense<0.000000e+00> : vector<2x128xf32>
    %165 = tpu.matmul %141, %4, %cst_50 {dimension_numbers = #tpu.dot_dimension_numbers<[1], [0], [0], [1], [0, 0, 1, 1], [], []>} : vector<2x32xf32>, vector<32x128xf32>, vector<2x128xf32> -> vector<2x128xf32>
    %166 = arith.addf %164, %165 : vector<2x128xf32>
    %167 = vector.broadcast %5 : vector<1x128xf32> to vector<2x128xf32>
    %168 = arith.addf %166, %167 : vector<2x128xf32>
    %169 = vector.extract_strided_slice %168 {offsets = [0, 0], sizes = [2, 96], strides = [1, 1]} : vector<2x128xf32> to vector<2x96xf32>
    %cst_51 = arith.constant 5.000000e-01 : f32
    %170 = vector.broadcast %cst_51 : f32 to vector<2x96xf32>
    %171 = arith.mulf %170, %169 : vector<2x96xf32>
    %172 = math.tanh %171 : vector<2x96xf32>
    %cst_52 = arith.constant 1.000000e+00 : f32
    %173 = vector.broadcast %cst_52 : f32 to vector<2x96xf32>
    %174 = arith.addf %172, %173 : vector<2x96xf32>
    %cst_53 = arith.constant 5.000000e-01 : f32
    %175 = vector.broadcast %cst_53 : f32 to vector<2x96xf32>
    %176 = arith.mulf %175, %174 : vector<2x96xf32>
    %177 = vector.extract_strided_slice %168 {offsets = [0, 96], sizes = [2, 32], strides = [1, 1]} : vector<2x128xf32> to vector<2x32xf32>
    %178 = math.tanh %177 : vector<2x32xf32>
    %179 = vector.extract_strided_slice %176 {offsets = [0, 0], sizes = [2, 32], strides = [1, 1]} : vector<2x96xf32> to vector<2x32xf32>
    %180 = vector.extract_strided_slice %176 {offsets = [0, 32], sizes = [2, 32], strides = [1, 1]} : vector<2x96xf32> to vector<2x32xf32>
    %181 = vector.extract_strided_slice %176 {offsets = [0, 64], sizes = [2, 32], strides = [1, 1]} : vector<2x96xf32> to vector<2x32xf32>
    %182 = arith.mulf %180, %139 : vector<2x32xf32>
    %183 = arith.mulf %179, %178 : vector<2x32xf32>
    %184 = arith.addf %182, %183 : vector<2x32xf32>
    %185 = math.tanh %184 : vector<2x32xf32>
    %186 = arith.mulf %181, %185 : vector<2x32xf32>
    %c4 = arith.constant 4 : index
    %c0_54 = arith.constant 0 : index
    %c0_55 = arith.constant 0 : index
    %187 = vector.load %arg2[%c4, %c0_54, %c0_55] : memref<8x2x128xf32, #tpu.memory_space<vmem>>, vector<1x2x128xf32>
    %188 = vector.shape_cast %187 : vector<1x2x128xf32> to vector<2x128xf32>
    %cst_56 = arith.constant dense<0.000000e+00> : vector<2x128xf32>
    %189 = tpu.matmul %163, %2, %cst_56 {dimension_numbers = #tpu.dot_dimension_numbers<[1], [0], [0], [1], [0, 0, 1, 1], [], []>} : vector<2x32xf32>, vector<32x128xf32>, vector<2x128xf32> -> vector<2x128xf32>
    %190 = arith.addf %188, %189 : vector<2x128xf32>
    %191 = vector.extract_strided_slice %190 {offsets = [0, 0], sizes = [2, 96], strides = [1, 1]} : vector<2x128xf32> to vector<2x96xf32>
    %cst_57 = arith.constant 5.000000e-01 : f32
    %192 = vector.broadcast %cst_57 : f32 to vector<2x96xf32>
    %193 = arith.mulf %192, %191 : vector<2x96xf32>
    %194 = math.tanh %193 : vector<2x96xf32>
    %cst_58 = arith.constant 1.000000e+00 : f32
    %195 = vector.broadcast %cst_58 : f32 to vector<2x96xf32>
    %196 = arith.addf %194, %195 : vector<2x96xf32>
    %cst_59 = arith.constant 5.000000e-01 : f32
    %197 = vector.broadcast %cst_59 : f32 to vector<2x96xf32>
    %198 = arith.mulf %197, %196 : vector<2x96xf32>
    %199 = vector.extract_strided_slice %190 {offsets = [0, 96], sizes = [2, 32], strides = [1, 1]} : vector<2x128xf32> to vector<2x32xf32>
    %200 = math.tanh %199 : vector<2x32xf32>
    %201 = vector.extract_strided_slice %198 {offsets = [0, 0], sizes = [2, 32], strides = [1, 1]} : vector<2x96xf32> to vector<2x32xf32>
    %202 = vector.extract_strided_slice %198 {offsets = [0, 32], sizes = [2, 32], strides = [1, 1]} : vector<2x96xf32> to vector<2x32xf32>
    %203 = vector.extract_strided_slice %198 {offsets = [0, 64], sizes = [2, 32], strides = [1, 1]} : vector<2x96xf32> to vector<2x32xf32>
    %204 = arith.mulf %202, %161 : vector<2x32xf32>
    %205 = arith.mulf %201, %200 : vector<2x32xf32>
    %206 = arith.addf %204, %205 : vector<2x32xf32>
    %207 = math.tanh %206 : vector<2x32xf32>
    %208 = arith.mulf %203, %207 : vector<2x32xf32>
    %cst_60 = arith.constant dense<0.000000e+00> : vector<2x128xf32>
    %209 = tpu.matmul %208, %3, %cst_60 {dimension_numbers = #tpu.dot_dimension_numbers<[1], [0], [0], [1], [0, 0, 1, 1], [], []>} : vector<2x32xf32>, vector<32x128xf32>, vector<2x128xf32> -> vector<2x128xf32>
    %cst_61 = arith.constant dense<0.000000e+00> : vector<2x128xf32>
    %210 = tpu.matmul %186, %4, %cst_61 {dimension_numbers = #tpu.dot_dimension_numbers<[1], [0], [0], [1], [0, 0, 1, 1], [], []>} : vector<2x32xf32>, vector<32x128xf32>, vector<2x128xf32> -> vector<2x128xf32>
    %211 = arith.addf %209, %210 : vector<2x128xf32>
    %212 = vector.broadcast %5 : vector<1x128xf32> to vector<2x128xf32>
    %213 = arith.addf %211, %212 : vector<2x128xf32>
    %214 = vector.extract_strided_slice %213 {offsets = [0, 0], sizes = [2, 96], strides = [1, 1]} : vector<2x128xf32> to vector<2x96xf32>
    %cst_62 = arith.constant 5.000000e-01 : f32
    %215 = vector.broadcast %cst_62 : f32 to vector<2x96xf32>
    %216 = arith.mulf %215, %214 : vector<2x96xf32>
    %217 = math.tanh %216 : vector<2x96xf32>
    %cst_63 = arith.constant 1.000000e+00 : f32
    %218 = vector.broadcast %cst_63 : f32 to vector<2x96xf32>
    %219 = arith.addf %217, %218 : vector<2x96xf32>
    %cst_64 = arith.constant 5.000000e-01 : f32
    %220 = vector.broadcast %cst_64 : f32 to vector<2x96xf32>
    %221 = arith.mulf %220, %219 : vector<2x96xf32>
    %222 = vector.extract_strided_slice %213 {offsets = [0, 96], sizes = [2, 32], strides = [1, 1]} : vector<2x128xf32> to vector<2x32xf32>
    %223 = math.tanh %222 : vector<2x32xf32>
    %224 = vector.extract_strided_slice %221 {offsets = [0, 0], sizes = [2, 32], strides = [1, 1]} : vector<2x96xf32> to vector<2x32xf32>
    %225 = vector.extract_strided_slice %221 {offsets = [0, 32], sizes = [2, 32], strides = [1, 1]} : vector<2x96xf32> to vector<2x32xf32>
    %226 = vector.extract_strided_slice %221 {offsets = [0, 64], sizes = [2, 32], strides = [1, 1]} : vector<2x96xf32> to vector<2x32xf32>
    %227 = arith.mulf %225, %184 : vector<2x32xf32>
    %228 = arith.mulf %224, %223 : vector<2x32xf32>
    %229 = arith.addf %227, %228 : vector<2x32xf32>
    %230 = math.tanh %229 : vector<2x32xf32>
    %231 = arith.mulf %226, %230 : vector<2x32xf32>
    %c5 = arith.constant 5 : index
    %c0_65 = arith.constant 0 : index
    %c0_66 = arith.constant 0 : index
    %232 = vector.load %arg2[%c5, %c0_65, %c0_66] : memref<8x2x128xf32, #tpu.memory_space<vmem>>, vector<1x2x128xf32>
    %233 = vector.shape_cast %232 : vector<1x2x128xf32> to vector<2x128xf32>
    %cst_67 = arith.constant dense<0.000000e+00> : vector<2x128xf32>
    %234 = tpu.matmul %208, %2, %cst_67 {dimension_numbers = #tpu.dot_dimension_numbers<[1], [0], [0], [1], [0, 0, 1, 1], [], []>} : vector<2x32xf32>, vector<32x128xf32>, vector<2x128xf32> -> vector<2x128xf32>
    %235 = arith.addf %233, %234 : vector<2x128xf32>
    %236 = vector.extract_strided_slice %235 {offsets = [0, 0], sizes = [2, 96], strides = [1, 1]} : vector<2x128xf32> to vector<2x96xf32>
    %cst_68 = arith.constant 5.000000e-01 : f32
    %237 = vector.broadcast %cst_68 : f32 to vector<2x96xf32>
    %238 = arith.mulf %237, %236 : vector<2x96xf32>
    %239 = math.tanh %238 : vector<2x96xf32>
    %cst_69 = arith.constant 1.000000e+00 : f32
    %240 = vector.broadcast %cst_69 : f32 to vector<2x96xf32>
    %241 = arith.addf %239, %240 : vector<2x96xf32>
    %cst_70 = arith.constant 5.000000e-01 : f32
    %242 = vector.broadcast %cst_70 : f32 to vector<2x96xf32>
    %243 = arith.mulf %242, %241 : vector<2x96xf32>
    %244 = vector.extract_strided_slice %235 {offsets = [0, 96], sizes = [2, 32], strides = [1, 1]} : vector<2x128xf32> to vector<2x32xf32>
    %245 = math.tanh %244 : vector<2x32xf32>
    %246 = vector.extract_strided_slice %243 {offsets = [0, 0], sizes = [2, 32], strides = [1, 1]} : vector<2x96xf32> to vector<2x32xf32>
    %247 = vector.extract_strided_slice %243 {offsets = [0, 32], sizes = [2, 32], strides = [1, 1]} : vector<2x96xf32> to vector<2x32xf32>
    %248 = vector.extract_strided_slice %243 {offsets = [0, 64], sizes = [2, 32], strides = [1, 1]} : vector<2x96xf32> to vector<2x32xf32>
    %249 = arith.mulf %247, %206 : vector<2x32xf32>
    %250 = arith.mulf %246, %245 : vector<2x32xf32>
    %251 = arith.addf %249, %250 : vector<2x32xf32>
    %252 = math.tanh %251 : vector<2x32xf32>
    %253 = arith.mulf %248, %252 : vector<2x32xf32>
    %cst_71 = arith.constant dense<0.000000e+00> : vector<2x128xf32>
    %254 = tpu.matmul %253, %3, %cst_71 {dimension_numbers = #tpu.dot_dimension_numbers<[1], [0], [0], [1], [0, 0, 1, 1], [], []>} : vector<2x32xf32>, vector<32x128xf32>, vector<2x128xf32> -> vector<2x128xf32>
    %cst_72 = arith.constant dense<0.000000e+00> : vector<2x128xf32>
    %255 = tpu.matmul %231, %4, %cst_72 {dimension_numbers = #tpu.dot_dimension_numbers<[1], [0], [0], [1], [0, 0, 1, 1], [], []>} : vector<2x32xf32>, vector<32x128xf32>, vector<2x128xf32> -> vector<2x128xf32>
    %256 = arith.addf %254, %255 : vector<2x128xf32>
    %257 = vector.broadcast %5 : vector<1x128xf32> to vector<2x128xf32>
    %258 = arith.addf %256, %257 : vector<2x128xf32>
    %259 = vector.extract_strided_slice %258 {offsets = [0, 0], sizes = [2, 96], strides = [1, 1]} : vector<2x128xf32> to vector<2x96xf32>
    %cst_73 = arith.constant 5.000000e-01 : f32
    %260 = vector.broadcast %cst_73 : f32 to vector<2x96xf32>
    %261 = arith.mulf %260, %259 : vector<2x96xf32>
    %262 = math.tanh %261 : vector<2x96xf32>
    %cst_74 = arith.constant 1.000000e+00 : f32
    %263 = vector.broadcast %cst_74 : f32 to vector<2x96xf32>
    %264 = arith.addf %262, %263 : vector<2x96xf32>
    %cst_75 = arith.constant 5.000000e-01 : f32
    %265 = vector.broadcast %cst_75 : f32 to vector<2x96xf32>
    %266 = arith.mulf %265, %264 : vector<2x96xf32>
    %267 = vector.extract_strided_slice %258 {offsets = [0, 96], sizes = [2, 32], strides = [1, 1]} : vector<2x128xf32> to vector<2x32xf32>
    %268 = math.tanh %267 : vector<2x32xf32>
    %269 = vector.extract_strided_slice %266 {offsets = [0, 0], sizes = [2, 32], strides = [1, 1]} : vector<2x96xf32> to vector<2x32xf32>
    %270 = vector.extract_strided_slice %266 {offsets = [0, 32], sizes = [2, 32], strides = [1, 1]} : vector<2x96xf32> to vector<2x32xf32>
    %271 = vector.extract_strided_slice %266 {offsets = [0, 64], sizes = [2, 32], strides = [1, 1]} : vector<2x96xf32> to vector<2x32xf32>
    %272 = arith.mulf %270, %229 : vector<2x32xf32>
    %273 = arith.mulf %269, %268 : vector<2x32xf32>
    %274 = arith.addf %272, %273 : vector<2x32xf32>
    %275 = math.tanh %274 : vector<2x32xf32>
    %276 = arith.mulf %271, %275 : vector<2x32xf32>
    %c6 = arith.constant 6 : index
    %c0_76 = arith.constant 0 : index
    %c0_77 = arith.constant 0 : index
    %277 = vector.load %arg2[%c6, %c0_76, %c0_77] : memref<8x2x128xf32, #tpu.memory_space<vmem>>, vector<1x2x128xf32>
    %278 = vector.shape_cast %277 : vector<1x2x128xf32> to vector<2x128xf32>
    %cst_78 = arith.constant dense<0.000000e+00> : vector<2x128xf32>
    %279 = tpu.matmul %253, %2, %cst_78 {dimension_numbers = #tpu.dot_dimension_numbers<[1], [0], [0], [1], [0, 0, 1, 1], [], []>} : vector<2x32xf32>, vector<32x128xf32>, vector<2x128xf32> -> vector<2x128xf32>
    %280 = arith.addf %278, %279 : vector<2x128xf32>
    %281 = vector.extract_strided_slice %280 {offsets = [0, 0], sizes = [2, 96], strides = [1, 1]} : vector<2x128xf32> to vector<2x96xf32>
    %cst_79 = arith.constant 5.000000e-01 : f32
    %282 = vector.broadcast %cst_79 : f32 to vector<2x96xf32>
    %283 = arith.mulf %282, %281 : vector<2x96xf32>
    %284 = math.tanh %283 : vector<2x96xf32>
    %cst_80 = arith.constant 1.000000e+00 : f32
    %285 = vector.broadcast %cst_80 : f32 to vector<2x96xf32>
    %286 = arith.addf %284, %285 : vector<2x96xf32>
    %cst_81 = arith.constant 5.000000e-01 : f32
    %287 = vector.broadcast %cst_81 : f32 to vector<2x96xf32>
    %288 = arith.mulf %287, %286 : vector<2x96xf32>
    %289 = vector.extract_strided_slice %280 {offsets = [0, 96], sizes = [2, 32], strides = [1, 1]} : vector<2x128xf32> to vector<2x32xf32>
    %290 = math.tanh %289 : vector<2x32xf32>
    %291 = vector.extract_strided_slice %288 {offsets = [0, 0], sizes = [2, 32], strides = [1, 1]} : vector<2x96xf32> to vector<2x32xf32>
    %292 = vector.extract_strided_slice %288 {offsets = [0, 32], sizes = [2, 32], strides = [1, 1]} : vector<2x96xf32> to vector<2x32xf32>
    %293 = vector.extract_strided_slice %288 {offsets = [0, 64], sizes = [2, 32], strides = [1, 1]} : vector<2x96xf32> to vector<2x32xf32>
    %294 = arith.mulf %292, %251 : vector<2x32xf32>
    %295 = arith.mulf %291, %290 : vector<2x32xf32>
    %296 = arith.addf %294, %295 : vector<2x32xf32>
    %297 = math.tanh %296 : vector<2x32xf32>
    %298 = arith.mulf %293, %297 : vector<2x32xf32>
    %cst_82 = arith.constant dense<0.000000e+00> : vector<2x128xf32>
    %299 = tpu.matmul %298, %3, %cst_82 {dimension_numbers = #tpu.dot_dimension_numbers<[1], [0], [0], [1], [0, 0, 1, 1], [], []>} : vector<2x32xf32>, vector<32x128xf32>, vector<2x128xf32> -> vector<2x128xf32>
    %cst_83 = arith.constant dense<0.000000e+00> : vector<2x128xf32>
    %300 = tpu.matmul %276, %4, %cst_83 {dimension_numbers = #tpu.dot_dimension_numbers<[1], [0], [0], [1], [0, 0, 1, 1], [], []>} : vector<2x32xf32>, vector<32x128xf32>, vector<2x128xf32> -> vector<2x128xf32>
    %301 = arith.addf %299, %300 : vector<2x128xf32>
    %302 = vector.broadcast %5 : vector<1x128xf32> to vector<2x128xf32>
    %303 = arith.addf %301, %302 : vector<2x128xf32>
    %304 = vector.extract_strided_slice %303 {offsets = [0, 0], sizes = [2, 96], strides = [1, 1]} : vector<2x128xf32> to vector<2x96xf32>
    %cst_84 = arith.constant 5.000000e-01 : f32
    %305 = vector.broadcast %cst_84 : f32 to vector<2x96xf32>
    %306 = arith.mulf %305, %304 : vector<2x96xf32>
    %307 = math.tanh %306 : vector<2x96xf32>
    %cst_85 = arith.constant 1.000000e+00 : f32
    %308 = vector.broadcast %cst_85 : f32 to vector<2x96xf32>
    %309 = arith.addf %307, %308 : vector<2x96xf32>
    %cst_86 = arith.constant 5.000000e-01 : f32
    %310 = vector.broadcast %cst_86 : f32 to vector<2x96xf32>
    %311 = arith.mulf %310, %309 : vector<2x96xf32>
    %312 = vector.extract_strided_slice %303 {offsets = [0, 96], sizes = [2, 32], strides = [1, 1]} : vector<2x128xf32> to vector<2x32xf32>
    %313 = math.tanh %312 : vector<2x32xf32>
    %314 = vector.extract_strided_slice %311 {offsets = [0, 0], sizes = [2, 32], strides = [1, 1]} : vector<2x96xf32> to vector<2x32xf32>
    %315 = vector.extract_strided_slice %311 {offsets = [0, 32], sizes = [2, 32], strides = [1, 1]} : vector<2x96xf32> to vector<2x32xf32>
    %316 = vector.extract_strided_slice %311 {offsets = [0, 64], sizes = [2, 32], strides = [1, 1]} : vector<2x96xf32> to vector<2x32xf32>
    %317 = arith.mulf %315, %274 : vector<2x32xf32>
    %318 = arith.mulf %314, %313 : vector<2x32xf32>
    %319 = arith.addf %317, %318 : vector<2x32xf32>
    %320 = math.tanh %319 : vector<2x32xf32>
    %321 = arith.mulf %316, %320 : vector<2x32xf32>
    %c7 = arith.constant 7 : index
    %c0_87 = arith.constant 0 : index
    %c0_88 = arith.constant 0 : index
    %322 = vector.load %arg2[%c7, %c0_87, %c0_88] : memref<8x2x128xf32, #tpu.memory_space<vmem>>, vector<1x2x128xf32>
    %323 = vector.shape_cast %322 : vector<1x2x128xf32> to vector<2x128xf32>
    %cst_89 = arith.constant dense<0.000000e+00> : vector<2x128xf32>
    %324 = tpu.matmul %298, %2, %cst_89 {dimension_numbers = #tpu.dot_dimension_numbers<[1], [0], [0], [1], [0, 0, 1, 1], [], []>} : vector<2x32xf32>, vector<32x128xf32>, vector<2x128xf32> -> vector<2x128xf32>
    %325 = arith.addf %323, %324 : vector<2x128xf32>
    %326 = vector.extract_strided_slice %325 {offsets = [0, 0], sizes = [2, 96], strides = [1, 1]} : vector<2x128xf32> to vector<2x96xf32>
    %cst_90 = arith.constant 5.000000e-01 : f32
    %327 = vector.broadcast %cst_90 : f32 to vector<2x96xf32>
    %328 = arith.mulf %327, %326 : vector<2x96xf32>
    %329 = math.tanh %328 : vector<2x96xf32>
    %cst_91 = arith.constant 1.000000e+00 : f32
    %330 = vector.broadcast %cst_91 : f32 to vector<2x96xf32>
    %331 = arith.addf %329, %330 : vector<2x96xf32>
    %cst_92 = arith.constant 5.000000e-01 : f32
    %332 = vector.broadcast %cst_92 : f32 to vector<2x96xf32>
    %333 = arith.mulf %332, %331 : vector<2x96xf32>
    %334 = vector.extract_strided_slice %325 {offsets = [0, 96], sizes = [2, 32], strides = [1, 1]} : vector<2x128xf32> to vector<2x32xf32>
    %335 = math.tanh %334 : vector<2x32xf32>
    %336 = vector.extract_strided_slice %333 {offsets = [0, 0], sizes = [2, 32], strides = [1, 1]} : vector<2x96xf32> to vector<2x32xf32>
    %337 = vector.extract_strided_slice %333 {offsets = [0, 32], sizes = [2, 32], strides = [1, 1]} : vector<2x96xf32> to vector<2x32xf32>
    %338 = vector.extract_strided_slice %333 {offsets = [0, 64], sizes = [2, 32], strides = [1, 1]} : vector<2x96xf32> to vector<2x32xf32>
    %339 = arith.mulf %337, %296 : vector<2x32xf32>
    %340 = arith.mulf %336, %335 : vector<2x32xf32>
    %341 = arith.addf %339, %340 : vector<2x32xf32>
    %342 = math.tanh %341 : vector<2x32xf32>
    %343 = arith.mulf %338, %342 : vector<2x32xf32>
    %cst_93 = arith.constant dense<0.000000e+00> : vector<2x128xf32>
    %344 = tpu.matmul %343, %3, %cst_93 {dimension_numbers = #tpu.dot_dimension_numbers<[1], [0], [0], [1], [0, 0, 1, 1], [], []>} : vector<2x32xf32>, vector<32x128xf32>, vector<2x128xf32> -> vector<2x128xf32>
    %cst_94 = arith.constant dense<0.000000e+00> : vector<2x128xf32>
    %345 = tpu.matmul %321, %4, %cst_94 {dimension_numbers = #tpu.dot_dimension_numbers<[1], [0], [0], [1], [0, 0, 1, 1], [], []>} : vector<2x32xf32>, vector<32x128xf32>, vector<2x128xf32> -> vector<2x128xf32>
    %346 = arith.addf %344, %345 : vector<2x128xf32>
    %347 = vector.broadcast %5 : vector<1x128xf32> to vector<2x128xf32>
    %348 = arith.addf %346, %347 : vector<2x128xf32>
    %349 = vector.extract_strided_slice %348 {offsets = [0, 0], sizes = [2, 96], strides = [1, 1]} : vector<2x128xf32> to vector<2x96xf32>
    %cst_95 = arith.constant 5.000000e-01 : f32
    %350 = vector.broadcast %cst_95 : f32 to vector<2x96xf32>
    %351 = arith.mulf %350, %349 : vector<2x96xf32>
    %352 = math.tanh %351 : vector<2x96xf32>
    %cst_96 = arith.constant 1.000000e+00 : f32
    %353 = vector.broadcast %cst_96 : f32 to vector<2x96xf32>
    %354 = arith.addf %352, %353 : vector<2x96xf32>
    %cst_97 = arith.constant 5.000000e-01 : f32
    %355 = vector.broadcast %cst_97 : f32 to vector<2x96xf32>
    %356 = arith.mulf %355, %354 : vector<2x96xf32>
    %357 = vector.extract_strided_slice %348 {offsets = [0, 96], sizes = [2, 32], strides = [1, 1]} : vector<2x128xf32> to vector<2x32xf32>
    %358 = math.tanh %357 : vector<2x32xf32>
    %359 = vector.extract_strided_slice %356 {offsets = [0, 0], sizes = [2, 32], strides = [1, 1]} : vector<2x96xf32> to vector<2x32xf32>
    %360 = vector.extract_strided_slice %356 {offsets = [0, 32], sizes = [2, 32], strides = [1, 1]} : vector<2x96xf32> to vector<2x32xf32>
    %361 = vector.extract_strided_slice %356 {offsets = [0, 64], sizes = [2, 32], strides = [1, 1]} : vector<2x96xf32> to vector<2x32xf32>
    %362 = arith.mulf %360, %319 : vector<2x32xf32>
    %363 = arith.mulf %359, %358 : vector<2x32xf32>
    %364 = arith.addf %362, %363 : vector<2x32xf32>
    %365 = math.tanh %364 : vector<2x32xf32>
    %366 = arith.mulf %361, %365 : vector<2x32xf32>
    %c0_98 = arith.constant 0 : index
    %c0_99 = arith.constant 0 : index
    %367 = vector.load %arg3[%c0_98, %c0_99] : memref<2x6xf32, #tpu.memory_space<vmem>>, vector<2x6xf32>
    %c0_100 = arith.constant 0 : index
    %c0_101 = arith.constant 0 : index
    %368 = vector.load %arg9[%c0_100, %c0_101] : memref<6x32xf32, #tpu.memory_space<vmem>>, vector<6x32xf32>
    %cst_102 = arith.constant dense<0.000000e+00> : vector<2x32xf32>
    %369 = tpu.matmul %367, %368, %cst_102 {dimension_numbers = #tpu.dot_dimension_numbers<[1], [0], [0], [1], [0, 0, 1, 1], [], []>} : vector<2x6xf32>, vector<6x32xf32>, vector<2x32xf32> -> vector<2x32xf32>
    %c0_103 = arith.constant 0 : index
    %c0_104 = arith.constant 0 : index
    %370 = vector.load %arg10[%c0_103, %c0_104] : memref<1x32xf32, #tpu.memory_space<vmem>>, vector<1x32xf32>
    %371 = vector.broadcast %370 : vector<1x32xf32> to vector<2x32xf32>
    %372 = arith.addf %369, %371 : vector<2x32xf32>
    %c0_105 = arith.constant 0 : index
    %c0_106 = arith.constant 0 : index
    %373 = vector.load %arg11[%c0_105, %c0_106] : memref<32x32xf32, #tpu.memory_space<vmem>>, vector<32x32xf32>
    %cst_107 = arith.constant dense<0.000000e+00> : vector<2x32xf32>
    %374 = tpu.matmul %366, %373, %cst_107 {dimension_numbers = #tpu.dot_dimension_numbers<[1], [0], [0], [1], [0, 0, 1, 1], [], []>} : vector<2x32xf32>, vector<32x32xf32>, vector<2x32xf32> -> vector<2x32xf32>
    %c0_108 = arith.constant 0 : index
    %c0_109 = arith.constant 0 : index
    %375 = vector.load %arg12[%c0_108, %c0_109] : memref<32x32xf32, #tpu.memory_space<vmem>>, vector<32x32xf32>
    %cst_110 = arith.constant dense<0.000000e+00> : vector<2x32xf32>
    %376 = tpu.matmul %372, %375, %cst_110 {dimension_numbers = #tpu.dot_dimension_numbers<[1], [0], [0], [1], [0, 0, 1, 1], [], []>} : vector<2x32xf32>, vector<32x32xf32>, vector<2x32xf32> -> vector<2x32xf32>
    %377 = arith.addf %374, %376 : vector<2x32xf32>
    %c0_111 = arith.constant 0 : index
    %c0_112 = arith.constant 0 : index
    %378 = vector.load %arg13[%c0_111, %c0_112] : memref<1x32xf32, #tpu.memory_space<vmem>>, vector<1x32xf32>
    %379 = vector.broadcast %378 : vector<1x32xf32> to vector<2x32xf32>
    %380 = arith.addf %377, %379 : vector<2x32xf32>
    %cst_113 = arith.constant 0.000000e+00 : f32
    %381 = vector.broadcast %cst_113 : f32 to vector<2x32xf32>
    %382 = arith.maximumf %380, %381 : vector<2x32xf32>
    %c0_114 = arith.constant 0 : index
    %c0_115 = arith.constant 0 : index
    %383 = vector.load %arg14[%c0_114, %c0_115] : memref<32x32xf32, #tpu.memory_space<vmem>>, vector<32x32xf32>
    %cst_116 = arith.constant dense<0.000000e+00> : vector<2x32xf32>
    %384 = tpu.matmul %382, %383, %cst_116 {dimension_numbers = #tpu.dot_dimension_numbers<[1], [0], [0], [1], [0, 0, 1, 1], [], []>} : vector<2x32xf32>, vector<32x32xf32>, vector<2x32xf32> -> vector<2x32xf32>
    %c0_117 = arith.constant 0 : index
    %c0_118 = arith.constant 0 : index
    %385 = vector.load %arg15[%c0_117, %c0_118] : memref<1x32xf32, #tpu.memory_space<vmem>>, vector<1x32xf32>
    %386 = vector.broadcast %385 : vector<1x32xf32> to vector<2x32xf32>
    %387 = arith.addf %384, %386 : vector<2x32xf32>
    %cst_119 = arith.constant 0.000000e+00 : f32
    %388 = vector.broadcast %cst_119 : f32 to vector<2x32xf32>
    %389 = arith.maximumf %387, %388 : vector<2x32xf32>
    %c0_120 = arith.constant 0 : index
    %c0_121 = arith.constant 0 : index
    %390 = vector.load %arg16[%c0_120, %c0_121] : memref<32x8xf32, #tpu.memory_space<vmem>>, vector<32x8xf32>
    %cst_122 = arith.constant dense<0.000000e+00> : vector<2x8xf32>
    %391 = tpu.matmul %389, %390, %cst_122 {dimension_numbers = #tpu.dot_dimension_numbers<[1], [0], [0], [1], [0, 0, 1, 1], [], []>} : vector<2x32xf32>, vector<32x8xf32>, vector<2x8xf32> -> vector<2x8xf32>
    %c0_123 = arith.constant 0 : index
    %c0_124 = arith.constant 0 : index
    %392 = vector.load %arg17[%c0_123, %c0_124] : memref<1x8xf32, #tpu.memory_space<vmem>>, vector<1x8xf32>
    %393 = vector.broadcast %392 : vector<1x8xf32> to vector<2x8xf32>
    %394 = arith.addf %391, %393 : vector<2x8xf32>
    %395 = vector.extract_strided_slice %394 {offsets = [0, 0], sizes = [2, 4], strides = [1, 1]} : vector<2x8xf32> to vector<2x4xf32>
    %396 = vector.extract_strided_slice %394 {offsets = [0, 4], sizes = [2, 4], strides = [1, 1]} : vector<2x8xf32> to vector<2x4xf32>
    %cst_125 = arith.constant -2.000000e+01 : f32
    %cst_126 = arith.constant 2.000000e+00 : f32
    %397 = vector.broadcast %cst_125 : f32 to vector<2x4xf32>
    %398 = arith.maximumf %397, %396 : vector<2x4xf32>
    %399 = vector.broadcast %cst_126 : f32 to vector<2x4xf32>
    %400 = arith.minimumf %399, %398 : vector<2x4xf32>
    %401 = math.exp %400 : vector<2x4xf32>
    %c0_127 = arith.constant 0 : index
    %c0_128 = arith.constant 0 : index
    %402 = vector.load %arg4[%c0_127, %c0_128] : memref<2x4xf32, #tpu.memory_space<vmem>>, vector<2x4xf32>
    %403 = arith.mulf %401, %402 : vector<2x4xf32>
    %404 = arith.addf %395, %403 : vector<2x4xf32>
    %cst_129 = arith.constant -5.000000e-01 : f32
    %405 = vector.broadcast %cst_129 : f32 to vector<2x4xf32>
    %406 = arith.mulf %405, %402 : vector<2x4xf32>
    %407 = arith.mulf %406, %402 : vector<2x4xf32>
    %408 = arith.subf %407, %400 : vector<2x4xf32>
    %cst_130 = arith.constant 6.28318548 : f32
    %409 = math.log %cst_130 : f32
    %cst_131 = arith.constant 5.000000e-01 : f32
    %410 = arith.mulf %cst_131, %409 : f32
    %411 = vector.broadcast %410 : f32 to vector<2x4xf32>
    %412 = arith.subf %408, %411 : vector<2x4xf32>
    %cst_132 = arith.constant dense<0.000000e+00> : vector<2xf32>
    %413 = vector.multi_reduction <add>, %412, %cst_132 [1] : vector<2x4xf32> to vector<2xf32>
    %414 = vector.shape_cast %413 : vector<2xf32> to vector<2x1xf32>
    %cst_133 = arith.constant -2.000000e+00 : f32
    %415 = vector.broadcast %cst_133 : f32 to vector<2x4xf32>
    %416 = arith.mulf %415, %404 : vector<2x4xf32>
    %cst_134 = arith.constant 0.000000e+00 : f32
    %417 = vector.broadcast %cst_134 : f32 to vector<2x4xf32>
    %418 = arith.maximumf %416, %417 : vector<2x4xf32>
    %419 = math.absf %416 : vector<2x4xf32>
    %cst_135 = arith.constant 0.000000e+00 : f32
    %420 = vector.broadcast %cst_135 : f32 to vector<2x4xf32>
    %421 = arith.subf %420, %419 : vector<2x4xf32>
    %422 = math.exp %421 : vector<2x4xf32>
    %423 = math.log1p %422 : vector<2x4xf32>
    %424 = arith.addf %418, %423 : vector<2x4xf32>
    %cst_136 = arith.constant 2.000000e+00 : f32
    %425 = math.log %cst_136 : f32
    %426 = vector.broadcast %425 : f32 to vector<2x4xf32>
    %427 = arith.subf %426, %404 : vector<2x4xf32>
    %428 = arith.subf %427, %424 : vector<2x4xf32>
    %cst_137 = arith.constant 2.000000e+00 : f32
    %429 = vector.broadcast %cst_137 : f32 to vector<2x4xf32>
    %430 = arith.mulf %429, %428 : vector<2x4xf32>
    %cst_138 = arith.constant dense<0.000000e+00> : vector<2xf32>
    %431 = vector.multi_reduction <add>, %430, %cst_138 [1] : vector<2x4xf32> to vector<2xf32>
    %432 = vector.shape_cast %431 : vector<2xf32> to vector<2x1xf32>
    %433 = arith.subf %414, %432 : vector<2x1xf32>
    %434 = math.tanh %404 : vector<2x4xf32>
    %cst_139 = arith.constant 1.000000e+00 : f32
    %435 = vector.broadcast %cst_139 : f32 to vector<2x4xf32>
    %436 = arith.addf %434, %435 : vector<2x4xf32>
    %cst_140 = arith.constant 5.000000e-01 : f32
    %437 = vector.broadcast %cst_140 : f32 to vector<2x4xf32>
    %438 = arith.mulf %437, %436 : vector<2x4xf32>
    %439 = arith.subf %1, %0 : f32
    %440 = vector.broadcast %439 : f32 to vector<2x4xf32>
    %441 = arith.mulf %438, %440 : vector<2x4xf32>
    %442 = vector.broadcast %0 : f32 to vector<2x4xf32>
    %443 = arith.addf %442, %441 : vector<2x4xf32>
    %cst_141 = arith.constant 0.000000e+00 : f32
    %444 = vector.broadcast %cst_141 : f32 to vector<2x123xf32>
    %445 = tpu.concatenate %443, %433, %444 in 1 : vector<2x4xf32>, vector<2x1xf32>, vector<2x123xf32> -> vector<2x128xf32>
    %c0_142 = arith.constant 0 : index
    %c0_143 = arith.constant 0 : index
    %446 = vector.load %arg18[%c0_142, %c0_143] : memref<2x128xf32, #tpu.memory_space<vmem>>, vector<2x128xf32>
    tpu.vector_store %arg18[%c0_142, %c0_143], %445 {strides = array<i32>} : memref<2x128xf32, #tpu.memory_space<vmem>>, vector<2x128xf32>,
    return
  }
  func.func @transform_0(%arg0: i32) -> i32 {
    %c0_i32 = arith.constant 0 : i32
    %c0_i32_0 = arith.constant 0 : i32
    return %c0_i32 : i32
  }
  func.func @transform_1(%arg0: i32) -> (i32, i32, i32) {
    %c0_i32 = arith.constant 0 : i32
    %c0_i32_0 = arith.constant 0 : i32
    %c0_i32_1 = arith.constant 0 : i32
    return %c0_i32, %arg0, %c0_i32_0 : i32, i32, i32
  }
  func.func @transform_2(%arg0: i32) -> (i32, i32) {
    %c0_i32 = arith.constant 0 : i32
    %c0_i32_0 = arith.constant 0 : i32
    return %arg0, %c0_i32 : i32, i32
  }
  func.func @transform_3(%arg0: i32) -> (i32, i32) {
    %c0_i32 = arith.constant 0 : i32
    %c0_i32_0 = arith.constant 0 : i32
    return %arg0, %c0_i32 : i32, i32
  }
  func.func @transform_4(%arg0: i32) -> (i32, i32) {
    %c0_i32 = arith.constant 0 : i32
    %c0_i32_0 = arith.constant 0 : i32
    %c0_i32_1 = arith.constant 0 : i32
    return %c0_i32, %c0_i32_0 : i32, i32
  }
  func.func @transform_5(%arg0: i32) -> (i32, i32) {
    %c0_i32 = arith.constant 0 : i32
    %c0_i32_0 = arith.constant 0 : i32
    %c0_i32_1 = arith.constant 0 : i32
    return %c0_i32, %c0_i32_0 : i32, i32
  }
  func.func @transform_6(%arg0: i32) -> (i32, i32) {
    %c0_i32 = arith.constant 0 : i32
    %c0_i32_0 = arith.constant 0 : i32
    %c0_i32_1 = arith.constant 0 : i32
    return %c0_i32, %c0_i32_0 : i32, i32
  }
  func.func @transform_7(%arg0: i32) -> (i32, i32) {
    %c0_i32 = arith.constant 0 : i32
    %c0_i32_0 = arith.constant 0 : i32
    %c0_i32_1 = arith.constant 0 : i32
    return %c0_i32, %c0_i32_0 : i32, i32
  }
  func.func @transform_8(%arg0: i32) -> (i32, i32) {
    %c0_i32 = arith.constant 0 : i32
    %c0_i32_0 = arith.constant 0 : i32
    %c0_i32_1 = arith.constant 0 : i32
    return %c0_i32, %c0_i32_0 : i32, i32
  }
  func.func @transform_9(%arg0: i32) -> (i32, i32) {
    %c0_i32 = arith.constant 0 : i32
    %c0_i32_0 = arith.constant 0 : i32
    %c0_i32_1 = arith.constant 0 : i32
    return %c0_i32, %c0_i32_0 : i32, i32
  }
  func.func @transform_10(%arg0: i32) -> (i32, i32) {
    %c0_i32 = arith.constant 0 : i32
    %c0_i32_0 = arith.constant 0 : i32
    %c0_i32_1 = arith.constant 0 : i32
    return %c0_i32, %c0_i32_0 : i32, i32
  }
  func.func @transform_11(%arg0: i32) -> (i32, i32) {
    %c0_i32 = arith.constant 0 : i32
    %c0_i32_0 = arith.constant 0 : i32
    %c0_i32_1 = arith.constant 0 : i32
    return %c0_i32, %c0_i32_0 : i32, i32
  }
  func.func @transform_12(%arg0: i32) -> (i32, i32) {
    %c0_i32 = arith.constant 0 : i32
    %c0_i32_0 = arith.constant 0 : i32
    %c0_i32_1 = arith.constant 0 : i32
    return %c0_i32, %c0_i32_0 : i32, i32
  }
  func.func @transform_13(%arg0: i32) -> (i32, i32) {
    %c0_i32 = arith.constant 0 : i32
    %c0_i32_0 = arith.constant 0 : i32
    %c0_i32_1 = arith.constant 0 : i32
    return %c0_i32, %c0_i32_0 : i32, i32
  }
  func.func @transform_14(%arg0: i32) -> (i32, i32) {
    %c0_i32 = arith.constant 0 : i32
    %c0_i32_0 = arith.constant 0 : i32
    %c0_i32_1 = arith.constant 0 : i32
    return %c0_i32, %c0_i32_0 : i32, i32
  }
  func.func @transform_15(%arg0: i32) -> (i32, i32) {
    %c0_i32 = arith.constant 0 : i32
    %c0_i32_0 = arith.constant 0 : i32
    %c0_i32_1 = arith.constant 0 : i32
    return %c0_i32, %c0_i32_0 : i32, i32
  }
  func.func @transform_16(%arg0: i32) -> (i32, i32) {
    %c0_i32 = arith.constant 0 : i32
    %c0_i32_0 = arith.constant 0 : i32
    %c0_i32_1 = arith.constant 0 : i32
    return %c0_i32, %c0_i32_0 : i32, i32
  }
  func.func @transform_17(%arg0: i32) -> (i32, i32) {
    %c0_i32 = arith.constant 0 : i32
    %c0_i32_0 = arith.constant 0 : i32
    return %arg0, %c0_i32 : i32, i32
  }
}

</mosaic_0001>

<bundles_post_ra>
// kernel: tpu_custom_call.1
= control target key start
LH: loop header
LB: loop body
LE: loop exit
PB: predicated region body
PF: predicated region fallthrough
CT: control target
= control target key end

     0   :  { %s4519_s0 = inlined_call_operand.hbm [shape: f32[2], index: 0, kind: input, shape index: {}]   ;;  %s4520_s1 = inlined_call_operand.hbm [shape: f32[8,2,128], index: 1, kind: input, shape index: {}]   ;;  %s4521_s2 = inlined_call_operand.vmem [shape: f32[2,6], index: 2, kind: input, shape index: {}]   ;;  %s4522_s3 = inlined_call_operand.hbm [shape: f32[2,4], index: 3, kind: input, shape index: {}]   ;;  %s4523_s4 = inlined_call_operand.vmem [shape: f32[32,128], index: 4, kind: input, shape index: {}]   ;;  %s4524_s5 = inlined_call_operand.hbm [shape: f32[32,128], index: 5, kind: input, shape index: {}]   ;;  %s4525_s6 = inlined_call_operand.hbm [shape: f32[32,128], index: 6, kind: input, shape index: {}]   ;;  %s4526_s7 = inlined_call_operand.hbm [shape: f32[1,128], index: 7, kind: input, shape index: {}]   ;;  %s4527_s8 = inlined_call_operand.hbm [shape: f32[6,32], index: 8, kind: input, shape index: {}]   ;;  %s4528_s9 = inlined_call_operand.hbm [shape: f32[1,32], index: 9, kind: input, shape index: {}]   ;;  %s4529_s10 = inlined_call_operand.vmem [shape: f32[32,32], index: 10, kind: input, shape index: {}]   ;;  %s4530_s11 = inlined_call_operand.hbm [shape: f32[32,32], index: 11, kind: input, shape index: {}]   ;;  %s4531_s12 = inlined_call_operand.vmem [shape: f32[1,32], index: 12, kind: input, shape index: {}]   ;;  %s4532_s13 = inlined_call_operand.hbm [shape: f32[32,32], index: 13, kind: input, shape index: {}]   ;;  %s4533_s14 = inlined_call_operand.vmem [shape: f32[1,32], index: 14, kind: input, shape index: {}]   ;;  %s4534_s15 = inlined_call_operand.vmem [shape: f32[32,8], index: 15, kind: input, shape index: {}]   ;;  %s4535_s16 = inlined_call_operand.vmem [shape: f32[1,8], index: 16, kind: input, shape index: {}]   ;;  %s4536_s17 = inlined_call_operand.hbm [shape: f32[2,128], index: 17, kind: output, shape index: {}]  }
   0x1   :  { %4539 = sst [smem:[#allocation27_spill]] %s4519_s0 }
   0x2   :  { %4540 = sst [smem:[#allocation28_spill]] %s4520_s1 }
   0x3   :  { %22 = vsyncpa [#allocation5], 0 }
   0x4   :  { %23 = vsyncpa [#allocation3], 0 }
   0x5   :  { %24 = vsyncpa [#allocation8], 0 }
   0x6   :  { %25 = vsyncpa [#allocation11], 0 }
   0x7   :  { %26 = vsyncpa [#allocation14], 0 }
   0x8   :  { %27 = vsyncpa [#allocation17], 0 }
   0x9   :  { %28 = vsyncpa [#allocation4], 0  ;;  %s3876_s24 = smov [#allocation7]   ;;  %s3632_s28 = scalar_lea.hbm %s4522_s3, 32 }
   0xa   :  { %s57_s25 = sshll.u32 %s3876_s24, 4  ;;  %p3633_p0 = scmp.ne.s32.totalorder %s4522_s3, %s3632_s28  ;;  %s58_s25 = int_to_ptr.vmem [resolvable:$true] %s57_s25 }
   0xb   :  { %p3636_p1 = scmp.lt.u32.totalorder %s3632_s28, %s4522_s3 }
   0xd   :  { %p3638_p2 = pnand %p3636_p1, %p3633_p0 }
   0xf   :  { %3641 = shalt.err (!%p3638_p2)
}
  0x10   :  { %s3642_s19 = scalar_lea.vmem %s58_s25, 32  ;;  %p3647_p4 = scmp.lt.s32.totalorder %s58_s25, %s58_s25 }
  0x11   :  { %p3643_p3 = scmp.ne.s32.totalorder %s58_s25, %s3642_s19  ;;  %p3648_p5 = scmp.lt.s32.totalorder %s3642_s19, %s3642_s19 }
  0x13   :  { %p3649_p6 = por %p3648_p5, %p3647_p4 }
  0x15   :  { %p3650_p7 = pnand %p3649_p6, %p3643_p3 }
  0x17   :  { %3653 = shalt.err (!%p3650_p7)
}
  0x18   :  { %60 = dma.hbm_to_vmem [thread:$0]  %s4522_s3, 32, %s58_s25, [#allocation8]  }
  0x19   :  { %s3877_s21 = smov [#allocation10]   ;;  %s3878_s23 = smov [#allocation13]  }
  0x1a   :  { %s80_s22 = sshll.u32 %s3877_s21, 4  ;;  %s103_s24 = sshll.u32 %s3878_s23, 4  ;;  %s81_s22 = int_to_ptr.vmem [resolvable:$true] %s80_s22  ;;  %s104_s24 = int_to_ptr.vmem [resolvable:$true] %s103_s24 }
  0x1b   :  { %s3654_s28 = scalar_lea.hbm %s4525_s6, 512 }
  0x1c   :  { %p3655_p8 = scmp.ne.s32.totalorder %s4525_s6, %s3654_s28  ;;  %p3658_p9 = scmp.lt.u32.totalorder %s3654_s28, %s4525_s6 }
  0x1e   :  { %p3660_p10 = pnand %p3658_p9, %p3655_p8 }
  0x20   :  { %3663 = shalt.err (!%p3660_p10)
}
  0x21   :  { %s3664_s3 = scalar_lea.vmem %s81_s22, 512  ;;  %p3669_p12 = scmp.lt.s32.totalorder %s81_s22, %s81_s22 }
  0x22   :  { %p3665_p11 = scmp.ne.s32.totalorder %s81_s22, %s3664_s3  ;;  %p3670_p13 = scmp.lt.s32.totalorder %s3664_s3, %s3664_s3 }
  0x24   :  { %p3671_p0 = por %p3670_p13, %p3669_p12 }
  0x26   :  { %p3672_p1 = pnand %p3671_p0, %p3665_p11 }
  0x28   :  { %3675 = shalt.err (!%p3672_p1)
}
  0x29   :  { %s3879_s25 = smov 128   ;;  %s3880_s19 = smov 8  }
  0x2a   :  { %86 = dma.hbm_to_vmem [thread:$0]  %s4525_s6, 512, %s81_s22, [#allocation11], %s3879_s25, %s3879_s25, %s3880_s19  }
  0x2b   :  { %s3676_s26 = scalar_lea.hbm %s4527_s8, 128 }
  0x2c   :  { %p3677_p2 = scmp.ne.s32.totalorder %s4527_s8, %s3676_s26  ;;  %p3680_p3 = scmp.lt.u32.totalorder %s3676_s26, %s4527_s8 }
  0x2e   :  { %p3682_p4 = pnand %p3680_p3, %p3677_p2 }
  0x30   :  { %3685 = shalt.err (!%p3682_p4)
}
  0x31   :  { %s3686_s30 = scalar_lea.vmem %s104_s24, 128  ;;  %p3691_p6 = scmp.lt.s32.totalorder %s104_s24, %s104_s24 }
  0x32   :  { %p3687_p5 = scmp.ne.s32.totalorder %s104_s24, %s3686_s30  ;;  %p3692_p7 = scmp.lt.s32.totalorder %s3686_s30, %s3686_s30 }
  0x34   :  { %p3693_p8 = por %p3692_p7, %p3691_p6 }
  0x36   :  { %p3694_p9 = pnand %p3693_p8, %p3687_p5 }
  0x38   :  { %3697 = shalt.err (!%p3694_p9)
}
  0x39   :  { %106 = dma.hbm_to_vmem [thread:$0]  %s4527_s8, 128, %s104_s24, [#allocation14]  }
  0x3a   :  { %s3881_s18 = smov [#allocation16]   ;;  %s3698_s21 = scalar_lea.hbm %s4530_s11, 512 }
  0x3b   :  { %s124_s3 = sshll.u32 %s3881_s18, 4  ;;  %p3699_p10 = scmp.ne.s32.totalorder %s4530_s11, %s3698_s21  ;;  %s125_s3 = int_to_ptr.vmem [resolvable:$true] %s124_s3 }
  0x3c   :  { %p3702_p11 = scmp.lt.u32.totalorder %s3698_s21, %s4530_s11 }
  0x3e   :  { %p3704_p12 = pnand %p3702_p11, %p3699_p10 }
  0x40   :  { %3707 = shalt.err (!%p3704_p12)
}
  0x41   :  { %s3708_s29 = scalar_lea.vmem %s125_s3, 512  ;;  %p3713_p0 = scmp.lt.s32.totalorder %s125_s3, %s125_s3 }
  0x42   :  { %p3709_p13 = scmp.ne.s32.totalorder %s125_s3, %s3708_s29  ;;  %p3714_p1 = scmp.lt.s32.totalorder %s3708_s29, %s3708_s29 }
  0x44   :  { %p3715_p2 = por %p3714_p1, %p3713_p0 }
  0x46   :  { %p3716_p3 = pnand %p3715_p2, %p3709_p13 }
  0x48   :  { %3719 = shalt.err (!%p3716_p3)
}
  0x49   :  { %130 = dma.hbm_to_vmem [thread:$0]  %s4530_s11, 512, %s125_s3, [#allocation17], %s3879_s25, %s3879_s25, %s3880_s19  }
  0x4a   :  { %s4541_s6 = sld [smem:[#allocation27_spill]] }
  0x50   :  { %s3720_s22 = scalar_lea.hbm %s4541_s6, 16 }
  0x51   :  { %p3721_p4 = scmp.ne.s32.totalorder %s4541_s6, %s3720_s22  ;;  %p3724_p5 = scmp.lt.u32.totalorder %s3720_s22, %s4541_s6 }
  0x53   :  { %p3726_p6 = pnand %p3724_p5, %p3721_p4 }
  0x55   :  { %3729 = shalt.err (!%p3726_p6)
}
  0x56   :  { %s3882_s23 = smov [#allocation2]   ;;  %s3883_s11 = smov [#allocation6]  }
  0x57   :  { %36 = dma.hbm_to_smem %s4541_s6, 16, %s3882_s23, [#allocation5]  }
  0x58   :  { %s42_s3 = sshll.u32 %s3883_s11, 4  ;;  %s4542_s8 = sld [smem:[#allocation28_spill]]  ;;  %s43_s3 = int_to_ptr.vmem [resolvable:$true] %s42_s3 }
  0x5e   :  { %s3730_s24 = scalar_lea.hbm %s4542_s8, 256 }
  0x5f   :  { %p3731_p7 = scmp.ne.s32.totalorder %s4542_s8, %s3730_s24  ;;  %p3734_p8 = scmp.lt.u32.totalorder %s3730_s24, %s4542_s8 }
  0x61   :  { %p3736_p9 = pnand %p3734_p8, %p3731_p7 }
  0x63   :  { %3739 = shalt.err (!%p3736_p9)
}
  0x64   :  { %s3740_s1 = scalar_lea.vmem %s43_s3, 256  ;;  %p3745_p11 = scmp.lt.s32.totalorder %s43_s3, %s43_s3 }
  0x65   :  { %p3741_p10 = scmp.ne.s32.totalorder %s43_s3, %s3740_s1  ;;  %p3746_p12 = scmp.lt.s32.totalorder %s3740_s1, %s3740_s1 }
  0x67   :  { %p3747_p13 = por %p3746_p12, %p3745_p11 }
  0x69   :  { %p3748_p0 = pnand %p3747_p13, %p3741_p10 }
  0x6b   :  { %3751 = shalt.err (!%p3748_p0)
}
  0x6c   :  { %s3884_s6 = smov 32   ;;  %s3885_s20 = smov 2  }
  0x6d   :  { %48 = dma.hbm_to_vmem [thread:$0]  %s4542_s8, 256, %s43_s3, [#allocation3], %s3884_s6, %s3884_s6, %s3885_s20  }
  0x6e   :  { %s3886_s26 = smov [#allocation9]   ;;  %s3887_s11 = smov [#allocation12]  }
  0x6f   :  { %s68_s27 = sshll.u32 %s3886_s26, 4  ;;  %s93_s28 = sshll.u32 %s3887_s11, 4  ;;  %s69_s27 = int_to_ptr.vmem [resolvable:$true] %s68_s27  ;;  %s94_s28 = int_to_ptr.vmem [resolvable:$true] %s93_s28 }
  0x70   :  { %s3752_s0 = scalar_lea.hbm %s4524_s5, 512 }
  0x71   :  { %p3753_p1 = scmp.ne.s32.totalorder %s4524_s5, %s3752_s0  ;;  %p3756_p2 = scmp.lt.u32.totalorder %s3752_s0, %s4524_s5 }
  0x73   :  { %p3758_p3 = pnand %p3756_p2, %p3753_p1 }
  0x75   :  { %3761 = shalt.err (!%p3758_p3)
}
  0x76   :  { %s3762_s3 = scalar_lea.vmem %s69_s27, 512  ;;  %p3767_p5 = scmp.lt.s32.totalorder %s69_s27, %s69_s27 }
  0x77   :  { %p3763_p4 = scmp.ne.s32.totalorder %s69_s27, %s3762_s3  ;;  %p3768_p6 = scmp.lt.s32.totalorder %s3762_s3, %s3762_s3 }
  0x79   :  { %p3769_p7 = por %p3768_p6, %p3767_p5 }
  0x7b   :  { %p3770_p8 = pnand %p3769_p7, %p3763_p4 }
  0x7d   :  { %3773 = shalt.err (!%p3770_p8)
}
  0x7e   :  { %74 = dma.hbm_to_vmem [thread:$0]  %s4524_s5, 512, %s69_s27, [#allocation8], %s3879_s25, %s3879_s25, %s3880_s19  }
  0x7f   :  { %s3774_s26 = scalar_lea.hbm %s4526_s7, 16 }
  0x80   :  { %p3775_p9 = scmp.ne.s32.totalorder %s4526_s7, %s3774_s26  ;;  %p3778_p10 = scmp.lt.u32.totalorder %s3774_s26, %s4526_s7 }
  0x82   :  { %p3780_p11 = pnand %p3778_p10, %p3775_p9 }
  0x84   :  { %3783 = shalt.err (!%p3780_p11)
}
  0x85   :  { %s3784_s30 = scalar_lea.vmem %s94_s28, 16  ;;  %s3788_s18 = scalar_lea.vmem %s94_s28, 32 }
  0x86   :  { %p3785_p12 = scmp.ne.s32.totalorder %s94_s28, %s3784_s30  ;;  %p3789_p13 = scmp.lt.s32.totalorder %s94_s28, %s94_s28 }
  0x87   :  { %p3790_p0 = scmp.lt.s32.totalorder %s3788_s18, %s3784_s30 }
  0x89   :  { %p3791_p1 = por %p3790_p0, %p3789_p13 }
  0x8b   :  { %p3792_p2 = pnand %p3791_p1, %p3785_p12 }
  0x8d   :  { %3795 = shalt.err (!%p3792_p2)
}
  0x8e   :  { %96 = dma.hbm_to_vmem [thread:$0]  %s4526_s7, 16, %s94_s28, [#allocation11]  }
  0x8f   :  { %s3888_s22 = smov [#allocation15]   ;;  %s3889_s3 = smov [#allocation18]  }
  0x90   :  { %s113_s1 = sshll.u32 %s3888_s22, 4  ;;  %s138_s8 = sshll.u32 %s3889_s3, 4  ;;  %s114_s1 = int_to_ptr.vmem [resolvable:$true] %s113_s1  ;;  %s4094_s8 = int_to_ptr.vmem [resolvable:$true] %s138_s8 }
  0x91   :  { %s3796_s23 = scalar_lea.hbm %s4528_s9, 16 }
  0x92   :  { %p3797_p3 = scmp.ne.s32.totalorder %s4528_s9, %s3796_s23  ;;  %p3800_p4 = scmp.lt.u32.totalorder %s3796_s23, %s4528_s9 }
  0x94   :  { %p3802_p5 = pnand %p3800_p4, %p3797_p3 }
  0x96   :  { %3805 = shalt.err (!%p3802_p5)
}
  0x97   :  { %s3806_s7 = scalar_lea.vmem %s114_s1, 16  ;;  %s3810_s28 = scalar_lea.vmem %s114_s1, 32 }
  0x98   :  { %p3807_p6 = scmp.ne.s32.totalorder %s114_s1, %s3806_s7  ;;  %p3811_p7 = scmp.lt.s32.totalorder %s114_s1, %s114_s1 }
  0x99   :  { %p3812_p8 = scmp.lt.s32.totalorder %s3810_s28, %s3806_s7 }
  0x9b   :  { %p3813_p9 = por %p3812_p8, %p3811_p7 }
  0x9d   :  { %p3814_p10 = pnand %p3813_p9, %p3807_p6 }
  0x9f   :  { %3817 = shalt.err (!%p3814_p10)
}
  0xa0   :  { %116 = dma.hbm_to_vmem [thread:$0]  %s4528_s9, 16, %s114_s1, [#allocation14]  }
  0xa1   :  { %s3818_s27 = scalar_lea.hbm %s4532_s13, 512 }
  0xa2   :  { %p3819_p11 = scmp.ne.s32.totalorder %s4532_s13, %s3818_s27  ;;  %p3822_p12 = scmp.lt.u32.totalorder %s3818_s27, %s4532_s13 }
  0xa4   :  { %p3824_p13 = pnand %p3822_p12, %p3819_p11 }
  0xa6   :  { %3827 = shalt.err (!%p3824_p13)
}
  0xa7   :  { %s3828_s23 = scalar_lea.vmem %s4094_s8, 512  ;;  %p3833_p1 = scmp.lt.s32.totalorder %s4094_s8, %s4094_s8 }
  0xa8   :  { %p3829_p0 = scmp.ne.s32.totalorder %s4094_s8, %s3828_s23  ;;  %p3834_p2 = scmp.lt.s32.totalorder %s3828_s23, %s3828_s23 }
  0xaa   :  { %p3835_p3 = por %p3834_p2, %p3833_p1 }
  0xac   :  { %p3836_p4 = pnand %p3835_p3, %p3829_p0 }
  0xae   :  { %3839 = shalt.err (!%p3836_p4)
}
  0xaf   :  { %144 = dma.hbm_to_vmem [thread:$0]  %s4532_s13, 512, %s4094_s8, [#allocation17], %s3879_s25, %s3879_s25, %s3880_s19  }
  0xb0   :  { %3862 = dma.done.wait [#allocation5], 16  }
  0xb1   :  { %3863 = vsyncadd [#allocation5], 4294967280 }
  0xb2   :  { %3864 = dma.done.wait [#allocation3], 256  }
  0xb3   :  { %3865 = vsyncadd [#allocation3], 4294967040 }
  0xb4   :  { %3866 = dma.done.wait [#allocation8], 544  }
  0xb5   :  { %3867 = vsyncadd [#allocation8], 4294966752 }
  0xb6   :  { %3868 = dma.done.wait [#allocation11], 528  }
  0xb7   :  { %3869 = vsyncadd [#allocation11], 4294966768 }
  0xb8   :  { %3870 = dma.done.wait [#allocation14], 144  }
  0xb9   :  { %3871 = vsyncadd [#allocation14], 4294967152 }
  0xba   :  { %3872 = dma.done.wait [#allocation17], 1024  }
  0xbb   :  { %3873 = vsyncadd [#allocation17], 4294966272 }
  0xbc   :  { %181 = sfence }
  0xbd   :  { %v184_v0 = vld [vmem:[%s4523_s4] sm:$0xff]  ;;  %v185_v1 = vld [vmem:[%s4523_s4 + $0x8] sm:$0xff]  ;;  %v186_v2 = vld [vmem:[%s4523_s4 + $0x10] sm:$0xff]  ;;  %v3890_v3 = vmov 0.0|0.0   ;;  %vm3891_vm0 = vmmov 0   ;;  %v3892_v6 = vmov 0.0  }
  0xbe   :  { %3339 = vmatprep.subr.bf16.mxu0 %v3890_v3  ;;  %v4138_v4 = vpack.c.bf16 %v185_v1, %v184_v0  ;;  %v187_v5 = vld [vmem:[%s4523_s4 + $0x18] sm:$0xff]  ;;  %3034 = vmatprep.mubr.msk.f32.mxu0 %vm3891_vm0, %v3892_v6  ;;  %v197_v8 = vld [vmem:[#allocation6] sm:$0x3]  ;;  %v194_v24 = vld [vmem:[#allocation10 + $0x10] sm:$0xff]  ;;  %s3893_s4 = smov 64   ;;  %vm198_vm1 = vcmask 261120  }
  0xbf   :  { %3345 = vmatprep.subr.bf16.mxu1 %v3890_v3  ;;  %3045 = vmatprep.mubr.msk.f32.mxu1 %vm3891_vm0, %v3892_v6  ;;  %v4149_v7 = vpack.c.bf16 %v187_v5, %v186_v2  ;;  %v192_v22 = vld [vmem:[#allocation10] sm:$0xff]  ;;  %v193_v23 = vld [vmem:[#allocation10 + $0x8] sm:$0xff]  ;;  %v195_v26 = vld [vmem:[#allocation10 + $0x18] sm:$0xff]  ;;  %vm2358_vm2 = vcmask 1045504   ;;  %vm2354_vm3 = vcmask 48128   ;;  %s3894_s24 = smov 4  }
  0xc0   :  { %3341 = vmatpush3.bf16.msra.mxu0 %v4138_v4  ;;  %v4162_v25 = vpack.c.bf16 %v193_v23, %v192_v22  ;;  %v188_v27 = vld [vmem:[#allocation9] sm:$0xff]  ;;  %v189_v28 = vld [vmem:[#allocation9 + $0x8] sm:$0xff]  ;;  %v190_v30 = vld [vmem:[#allocation9 + $0x10] sm:$0xff]  ;;  %v4167_v32 = vpack.c.bf16 %v195_v26, %v194_v24  ;;  %vm2789_vm4 = vcmask 25600   ;;  %vm2824_vm6 = vcmask 31744  }
  0xc1   :  { %3342 = vmatprep.subr.bf16.mxu0 %v3890_v3  ;;  %v4164_v29 = vpack.c.bf16 %v189_v28, %v188_v27  ;;  %v191_v31 = vld [vmem:[#allocation9 + $0x18] sm:$0xff]  ;;  %v470_v40 = vld [vmem:[#allocation6 + $0x2] sm:$0x3]  ;;  %v4201_v41 = vld [vmem:[#allocation12] ss:$0 sm:$0xff]  ;;  %vm2826_vm7 = vcmask 39936  }
  0xc2   :  { %3347 = vmatpush3.bf16.msra.mxu1 %v4162_v25  ;;  %v4171_v33 = vpack.c.bf16 %v191_v31, %v190_v30  ;;  %v738_v23 = vld [vmem:[#allocation6 + $0x4] sm:$0x3] }
  0xc3   :  { %3348 = vmatprep.subr.bf16.mxu1 %v3890_v3 }
  0xc4   :  { %3344 = vmatpush3.bf16.msra.mxu0 %v4149_v7 }
  0xc5   :  { %3351 = vmatprep.subr.bf16.mxu0 %v3890_v3 }
  0xc6   :  { %3350 = vmatpush3.bf16.msra.mxu1 %v4167_v32 }
  0xc7   :  { %3035 = vmatmul.mubr.f32.vlgmr.msra.gmra.mrb[0].mxu0 %v3892_v6  ;;  %3357 = vmatprep.subr.bf16.mxu1 %v3890_v3 }
  0xc8   :  { %3056 = vmatprep.mubr.msk.f32.mxu0 %vm3891_vm0, %v3892_v6  ;;  %3353 = vmatpush3.bf16.msra.mxu0 %v4164_v29 }
  0xc9   :  { %3354 = vmatprep.subr.bf16.mxu0 %v3890_v3  ;;  %3046 = vmatmul.mubr.f32.vlgmr.msra.gmra.mrb[0].mxu1 %v3892_v6 }
  0xca   :  { %3359 = vmatpush3.bf16.msra.mxu1 %v4138_v4  ;;  %3067 = vmatprep.mubr.msk.f32.mxu1 %vm3891_vm0, %v3892_v6 }
  0xcb   :  { %3360 = vmatprep.subr.bf16.mxu1 %v3890_v3 }
  0xcc   :  { %3356 = vmatpush3.bf16.msra.mxu0 %v4171_v33 }
  0xcd   :  { %3363 = vmatprep.subr.bf16.mxu0 %v3890_v3 }
  0xce   :  { %3362 = vmatpush3.bf16.msra.mxu1 %v4149_v7 }
  0xcf   :  { %3369 = vmatprep.subr.bf16.mxu1 %v3890_v3 }
 0x19a   :  { %v268_v9 = vpop.f32.mrb[0].mxu0 }
 0x19b   :  { %v272_v10 = vadd.f32 %v268_v9, %v197_v8  ;;  %v3036_v11 = vpop.f32.mrb[1].mxu0 }
 0x19c   :  { %v361_v37 = vpop.f32.mrb[0].mxu1 }
 0x19d   :  { %3528 = vtanh.f32 %v272_v10  ;;  %v273_v13 = vmul.f32 0.5, %v272_v10  ;;  %v3047_v38 = vpop.f32.mrb[1].mxu1 }
 0x19f   :  { %3530 = vtanh.f32 %v273_v13 }
 0x1a7   :  { %v3529_v12 = vpop.eup %3528 }
 0x1a8   :  { %280 = vrot.lane.b32.xlu0 %v3529_v12, %s3884_s6 }
 0x1a9   :  { %v3531_v14 = vpop.eup %3530 }
 0x1aa   :  { %v275_v15 = vadd.f32 1.0, %v3531_v14 }
 0x1ac   :  { %v276_v16 = vmul.f32 0.5, %v275_v15 }
 0x1ae   :  { %v278_v19 = vmul.f32 0.0, %v276_v16 }
 0x21a   :  { %v281_v17 = vpop.permute.xlu0 %280 }
 0x21b   :  { %v283_v18 = vmul.f32 %v281_v17, %v276_v16 }
 0x21d   :  { %285 = vrot.lane.b32.xlu0 %v283_v18, %s3884_s6 }
 0x28f   :  { %v286_v20 = vpop.permute.xlu0 %285 }
 0x290   :  { %v4159_v21 = vadd.f32 %v286_v20, %v278_v19 }
 0x292   :  { %3532 = vtanh.f32 %v4159_v21 }
 0x29c   :  { %v3533_v34 = vpop.eup %3532 }
 0x29d   :  { %291 = vrot.lane.b32.xlu1 %v3533_v34, %s3884_s6 }
 0x30f   :  { %v292_v35 = vpop.permute.xlu1 %291 }
 0x310   :  { %v294_v36 = vmul.f32 %v292_v35, %v276_v16 }
 0x312   :  { %366 = vrot.lane.b32.xlu1 %v294_v36, %s3893_s4 }
 0x384   :  { %v367_v39 = vpop.permute.xlu1 %366 }
 0x385   :  { %3057 = vmatmul.mubr.msk.f32.vlgmr.msra.gmra.mrb[2].mxu0 %vm198_vm1, %v367_v39  ;;  %3068 = vmatmul.mubr.msk.f32.vlgmr.msra.gmra.mrb[2].mxu1 %vm198_vm1, %v367_v39 }
 0x386   :  { %3371 = vmatpush3.bf16.msra.mxu1 %v4164_v29  ;;  %3365 = vmatpush3.bf16.msra.mxu0 %v4162_v25 }
 0x387   :  { %3372 = vmatprep.subr.bf16.mxu1 %v3890_v3  ;;  %3366 = vmatprep.subr.bf16.mxu0 %v3890_v3 }
 0x388   :  { %3089 = vmatprep.mubr.msk.f32.mxu1 %vm3891_vm0, %v3892_v6  ;;  %3078 = vmatprep.mubr.msk.f32.mxu0 %vm3891_vm0, %v3892_v6 }
 0x38a   :  { %3374 = vmatpush3.bf16.msra.mxu1 %v4171_v33  ;;  %3368 = vmatpush3.bf16.msra.mxu0 %v4167_v32 }
 0x38b   :  { %3375 = vmatprep.subr.bf16.mxu0 %v3890_v3  ;;  %3381 = vmatprep.subr.bf16.mxu1 %v3890_v3 }
 0x458   :  { %v436_v42 = vpop.f32.mrb[2].mxu0  ;;  %v537_v43 = vpop.f32.mrb[2].mxu1 }
 0x459   :  { %v437_v44 = vadd.f32 %v436_v42, %v361_v37  ;;  %v541_v45 = vadd.f32 %v537_v43, %v470_v40  ;;  %v3058_v46 = vpop.f32.mrb[3].mxu0  ;;  %v3069_v47 = vpop.f32.mrb[3].mxu1 }
 0x45b   :  { %v446_v48 = vadd.f32 %v4201_v41, %v437_v44  ;;  %3534 = vtanh.f32 %v541_v45  ;;  %v542_v51 = vmul.f32 0.5, %v541_v45 }
 0x45d   :  { %3536 = vtanh.f32 %v446_v48  ;;  %v447_v52 = vmul.f32 0.5, %v446_v48 }
 0x45e   :  { %3538 = vtanh.f32 %v542_v51 }
 0x45f   :  { %3540 = vtanh.f32 %v447_v52 }
 0x465   :  { %v3535_v49 = vpop.eup %3534 }
 0x466   :  { %549 = vrot.lane.b32.xlu1 %v3535_v49, %s3884_s6 }
 0x467   :  { %v3537_v50 = vpop.eup %3536 }
 0x468   :  { %454 = vrot.lane.b32.xlu0 %v3537_v50, %s3884_s6  ;;  %v3539_v53 = vpop.eup %3538 }
 0x469   :  { %v3541_v54 = vpop.eup %3540  ;;  %v544_v55 = vadd.f32 1.0, %v3539_v53 }
 0x46a   :  { %v449_v56 = vadd.f32 1.0, %v3541_v54 }
 0x46b   :  { %v545_v57 = vmul.f32 0.5, %v544_v55 }
 0x46c   :  { %v450_v60 = vmul.f32 0.5, %v449_v56 }
 0x46d   :  { %v547_v63 = vmul.f32 %v545_v57, %v4159_v21 }
 0x46e   :  { %v452_v2 = vmul.f32 0.0, %v450_v60 }
 0x4d8   :  { %v550_v58 = vpop.permute.xlu1 %549 }
 0x4d9   :  { %v552_v59 = vmul.f32 %v550_v58, %v545_v57 }
 0x4da   :  { %v455_v61 = vpop.permute.xlu0 %454 }
 0x4db   :  { %v457_v62 = vmul.f32 %v455_v61, %v450_v60  ;;  %554 = vrot.lane.b32.xlu1 %v552_v59, %s3884_s6 }
 0x4dd   :  { %459 = vrot.lane.b32.xlu0 %v457_v62, %s3884_s6 }
 0x54d   :  { %v555_v0 = vpop.permute.xlu1 %554 }
 0x54e   :  { %v4209_v1 = vadd.f32 %v555_v0, %v547_v63  ;;  %v1006_v63 = vld [vmem:[#allocation6 + $0x6] sm:$0x3] }
 0x54f   :  { %v460_v5 = vpop.permute.xlu0 %459 }
 0x550   :  { %3542 = vtanh.f32 %v4209_v1  ;;  %v4212_v8 = vadd.f32 %v460_v5, %v452_v2 }
 0x552   :  { %3544 = vtanh.f32 %v4212_v8 }
 0x55a   :  { %v3543_v9 = vpop.eup %3542 }
 0x55b   :  { %560 = vrot.lane.b32.xlu1 %v3543_v9, %s3884_s6 }
 0x55c   :  { %v3545_v10 = vpop.eup %3544 }
 0x55d   :  { %465 = vrot.lane.b32.xlu0 %v3545_v10, %s3884_s6 }
 0x5cd   :  { %v561_v11 = vpop.permute.xlu1 %560 }
 0x5ce   :  { %v563_v12 = vmul.f32 %v561_v11, %v545_v57 }
 0x5cf   :  { %v466_v13 = vpop.permute.xlu0 %465 }
 0x5d0   :  { %v468_v14 = vmul.f32 %v466_v13, %v450_v60  ;;  %640 = vrot.lane.b32.xlu1 %v563_v12, %s3893_s4 }
 0x5d2   :  { %565 = vrot.lane.b32.xlu0 %v468_v14, %s3893_s4 }
 0x642   :  { %v641_v15 = vpop.permute.xlu1 %640 }
 0x643   :  { %3090 = vmatmul.mubr.msk.f32.vlgmr.msra.gmra.mrb[4].mxu1 %vm198_vm1, %v641_v15 }
 0x644   :  { %v566_v16 = vpop.permute.xlu0 %565  ;;  %3383 = vmatpush3.bf16.msra.mxu1 %v4162_v25  ;;  %3111 = vmatprep.mubr.msk.f32.mxu1 %vm3891_vm0, %v3892_v6 }
 0x645   :  { %3079 = vmatmul.mubr.msk.f32.vlgmr.msra.gmra.mrb[4].mxu0 %vm198_vm1, %v566_v16  ;;  %3384 = vmatprep.subr.bf16.mxu1 %v3890_v3 }
 0x646   :  { %3377 = vmatpush3.bf16.msra.mxu0 %v4138_v4  ;;  %3100 = vmatprep.mubr.msk.f32.mxu0 %vm3891_vm0, %v3892_v6 }
 0x647   :  { %3378 = vmatprep.subr.bf16.mxu0 %v3890_v3 }
 0x648   :  { %3386 = vmatpush3.bf16.msra.mxu1 %v4167_v32 }
 0x649   :  { %3393 = vmatprep.subr.bf16.mxu1 %v3890_v3 }
 0x64a   :  { %3380 = vmatpush3.bf16.msra.mxu0 %v4149_v7 }
 0x64b   :  { %3387 = vmatprep.subr.bf16.mxu0 %v3890_v3 }
 0x64d   :  { %3101 = vmatmul.mubr.msk.f32.vlgmr.msra.gmra.mrb[6].mxu0 %vm198_vm1, %v641_v15 }
 0x64e   :  { %3389 = vmatpush3.bf16.msra.mxu0 %v4164_v29  ;;  %3122 = vmatprep.mubr.msk.f32.mxu0 %vm3891_vm0, %v3892_v6 }
 0x64f   :  { %3390 = vmatprep.subr.bf16.mxu0 %v3890_v3 }
 0x652   :  { %3392 = vmatpush3.bf16.msra.mxu0 %v4171_v33 }
 0x653   :  { %3399 = vmatprep.subr.bf16.mxu0 %v3890_v3 }
 0x716   :  { %v710_v17 = vpop.f32.mrb[4].mxu1 }
 0x717   :  { %v3091_v18 = vpop.f32.mrb[5].mxu1 }
 0x718   :  { %v635_v19 = vpop.f32.mrb[4].mxu0 }
 0x719   :  { %v711_v20 = vadd.f32 %v710_v17, %v635_v19  ;;  %v3080_v21 = vpop.f32.mrb[5].mxu0 }
 0x71b   :  { %v714_v22 = vadd.f32 %v4201_v41, %v711_v20 }
 0x71d   :  { %3546 = vtanh.f32 %v714_v22  ;;  %v715_v31 = vmul.f32 0.5, %v714_v22 }
 0x720   :  { %v805_v24 = vpop.f32.mrb[6].mxu0 }
 0x721   :  { %v809_v26 = vadd.f32 %v805_v24, %v738_v23  ;;  %v3102_v27 = vpop.f32.mrb[7].mxu0 }
 0x723   :  { %3548 = vtanh.f32 %v809_v26  ;;  %v810_v34 = vmul.f32 0.5, %v809_v26 }
 0x724   :  { %3550 = vtanh.f32 %v715_v31 }
 0x725   :  { %3552 = vtanh.f32 %v810_v34 }
 0x727   :  { %v3547_v28 = vpop.eup %3546 }
 0x728   :  { %722 = vrot.lane.b32.xlu0 %v3547_v28, %s3884_s6 }
 0x72d   :  { %v3549_v30 = vpop.eup %3548 }
 0x72e   :  { %817 = vrot.lane.b32.xlu1 %v3549_v30, %s3884_s6  ;;  %v3551_v35 = vpop.eup %3550 }
 0x72f   :  { %v717_v36 = vadd.f32 1.0, %v3551_v35  ;;  %v3553_v37 = vpop.eup %3552 }
 0x730   :  { %v812_v42 = vadd.f32 1.0, %v3553_v37 }
 0x731   :  { %v718_v38 = vmul.f32 0.5, %v717_v36 }
 0x732   :  { %v813_v43 = vmul.f32 0.5, %v812_v42 }
 0x733   :  { %v720_v46 = vmul.f32 %v718_v38, %v4212_v8 }
 0x734   :  { %v815_v49 = vmul.f32 %v813_v43, %v4209_v1 }
 0x79a   :  { %v723_v39 = vpop.permute.xlu0 %722 }
 0x79b   :  { %v725_v40 = vmul.f32 %v723_v39, %v718_v38 }
 0x79d   :  { %727 = vrot.lane.b32.xlu0 %v725_v40, %s3884_s6 }
 0x7a0   :  { %v818_v44 = vpop.permute.xlu1 %817 }
 0x7a1   :  { %v820_v45 = vmul.f32 %v818_v44, %v813_v43 }
 0x7a3   :  { %822 = vrot.lane.b32.xlu1 %v820_v45, %s3884_s6 }
 0x80f   :  { %v728_v47 = vpop.permute.xlu0 %727 }
 0x810   :  { %v4246_v48 = vadd.f32 %v728_v47, %v720_v46 }
 0x812   :  { %3554 = vtanh.f32 %v4246_v48 }
 0x815   :  { %v823_v50 = vpop.permute.xlu1 %822 }
 0x816   :  { %v4250_v51 = vadd.f32 %v823_v50, %v815_v49  ;;  %v1274_v49 = vld [vmem:[#allocation6 + $0x8] sm:$0x3] }
 0x818   :  { %3556 = vtanh.f32 %v4250_v51 }
 0x81c   :  { %v3555_v52 = vpop.eup %3554 }
 0x81d   :  { %733 = vrot.lane.b32.xlu0 %v3555_v52, %s3884_s6 }
 0x822   :  { %v3557_v53 = vpop.eup %3556 }
 0x823   :  { %828 = vrot.lane.b32.xlu1 %v3557_v53, %s3884_s6 }
 0x88f   :  { %v734_v54 = vpop.permute.xlu0 %733 }
 0x890   :  { %v736_v55 = vmul.f32 %v734_v54, %v718_v38 }
 0x892   :  { %833 = vrot.lane.b32.xlu0 %v736_v55, %s3893_s4 }
 0x895   :  { %v829_v56 = vpop.permute.xlu1 %828 }
 0x896   :  { %v831_v57 = vmul.f32 %v829_v56, %v813_v43 }
 0x898   :  { %908 = vrot.lane.b32.xlu1 %v831_v57, %s3893_s4 }
 0x904   :  { %v834_v58 = vpop.permute.xlu0 %833 }
 0x905   :  { %3112 = vmatmul.mubr.msk.f32.vlgmr.msra.gmra.mrb[6].mxu1 %vm198_vm1, %v834_v58 }
 0x906   :  { %3395 = vmatpush3.bf16.msra.mxu1 %v4138_v4  ;;  %3133 = vmatprep.mubr.msk.f32.mxu1 %vm3891_vm0, %v3892_v6 }
 0x907   :  { %3396 = vmatprep.subr.bf16.mxu1 %v3890_v3 }
 0x90a   :  { %3398 = vmatpush3.bf16.msra.mxu1 %v4149_v7  ;;  %v909_v59 = vpop.permute.xlu1 %908 }
 0x90b   :  { %3123 = vmatmul.mubr.msk.f32.vlgmr.msra.gmra.mrb[8].mxu0 %vm198_vm1, %v909_v59  ;;  %3405 = vmatprep.subr.bf16.mxu1 %v3890_v3 }
 0x90c   :  { %3401 = vmatpush3.bf16.msra.mxu0 %v4162_v25  ;;  %3144 = vmatprep.mubr.msk.f32.mxu0 %vm3891_vm0, %v3892_v6 }
 0x90d   :  { %3134 = vmatmul.mubr.msk.f32.vlgmr.msra.gmra.mrb[8].mxu1 %vm198_vm1, %v909_v59  ;;  %3402 = vmatprep.subr.bf16.mxu0 %v3890_v3 }
 0x90e   :  { %3407 = vmatpush3.bf16.msra.mxu1 %v4164_v29  ;;  %3155 = vmatprep.mubr.msk.f32.mxu1 %vm3891_vm0, %v3892_v6 }
 0x90f   :  { %3408 = vmatprep.subr.bf16.mxu1 %v3890_v3 }
 0x910   :  { %3404 = vmatpush3.bf16.msra.mxu0 %v4167_v32 }
 0x911   :  { %3411 = vmatprep.subr.bf16.mxu0 %v3890_v3 }
 0x912   :  { %3410 = vmatpush3.bf16.msra.mxu1 %v4171_v33 }
 0x913   :  { %3417 = vmatprep.subr.bf16.mxu1 %v3890_v3 }
 0x9d8   :  { %v903_v60 = vpop.f32.mrb[6].mxu1 }
 0x9d9   :  { %v3113_v61 = vpop.f32.mrb[7].mxu1 }
 0x9de   :  { %v978_v62 = vpop.f32.mrb[8].mxu0 }
 0x9df   :  { %v979_v0 = vadd.f32 %v978_v62, %v903_v60  ;;  %v3124_v1 = vpop.f32.mrb[9].mxu0 }
 0x9e0   :  { %v1073_v2 = vpop.f32.mrb[8].mxu1 }
 0x9e1   :  { %v982_v5 = vadd.f32 %v4201_v41, %v979_v0  ;;  %v1077_v8 = vadd.f32 %v1073_v2, %v1006_v63  ;;  %v3135_v9 = vpop.f32.mrb[9].mxu1 }
 0x9e3   :  { %3558 = vtanh.f32 %v982_v5  ;;  %v983_v12 = vmul.f32 0.5, %v982_v5  ;;  %v1078_v13 = vmul.f32 0.5, %v1077_v8 }
 0x9e4   :  { %3560 = vtanh.f32 %v1077_v8 }
 0x9e5   :  { %3562 = vtanh.f32 %v983_v12 }
 0x9e6   :  { %3564 = vtanh.f32 %v1078_v13 }
 0x9ed   :  { %v3559_v10 = vpop.eup %3558 }
 0x9ee   :  { %v3561_v11 = vpop.eup %3560  ;;  %990 = vrot.lane.b32.xlu0 %v3559_v10, %s3884_s6 }
 0x9ef   :  { %1085 = vrot.lane.b32.xlu1 %v3561_v11, %s3884_s6  ;;  %v3563_v14 = vpop.eup %3562 }
 0x9f0   :  { %v3565_v15 = vpop.eup %3564  ;;  %v985_v16 = vadd.f32 1.0, %v3563_v14 }
 0x9f1   :  { %v1080_v17 = vadd.f32 1.0, %v3565_v15 }
 0x9f2   :  { %v986_v18 = vmul.f32 0.5, %v985_v16 }
 0x9f3   :  { %v1081_v19 = vmul.f32 0.5, %v1080_v17 }
 0x9f4   :  { %v988_v24 = vmul.f32 %v986_v18, %v4246_v48 }
 0x9f5   :  { %v1083_v26 = vmul.f32 %v1081_v19, %v4250_v51 }
 0xa60   :  { %v991_v20 = vpop.permute.xlu0 %990 }
 0xa61   :  { %v1086_v21 = vpop.permute.xlu1 %1085  ;;  %v993_v22 = vmul.f32 %v991_v20, %v986_v18 }
 0xa62   :  { %v1088_v23 = vmul.f32 %v1086_v21, %v1081_v19 }
 0xa63   :  { %995 = vrot.lane.b32.xlu0 %v993_v22, %s3884_s6 }
 0xa64   :  { %1090 = vrot.lane.b32.xlu1 %v1088_v23, %s3884_s6 }
 0xad5   :  { %v996_v27 = vpop.permute.xlu0 %995 }
 0xad6   :  { %v1091_v28 = vpop.permute.xlu1 %1090  ;;  %v4285_v30 = vadd.f32 %v996_v27, %v988_v24  ;;  %v1542_v27 = vld [vmem:[#allocation6 + $0xa] sm:$0x3] }
 0xad7   :  { %v4287_v31 = vadd.f32 %v1091_v28, %v1083_v26 }
 0xad8   :  { %3566 = vtanh.f32 %v4285_v30 }
 0xad9   :  { %3568 = vtanh.f32 %v4287_v31 }
 0xae2   :  { %v3567_v34 = vpop.eup %3566 }
 0xae3   :  { %v3569_v35 = vpop.eup %3568  ;;  %1001 = vrot.lane.b32.xlu0 %v3567_v34, %s3884_s6 }
 0xae4   :  { %1096 = vrot.lane.b32.xlu1 %v3569_v35, %s3884_s6 }
 0xb55   :  { %v1002_v36 = vpop.permute.xlu0 %1001 }
 0xb56   :  { %v1097_v37 = vpop.permute.xlu1 %1096  ;;  %v1004_v38 = vmul.f32 %v1002_v36, %v986_v18 }
 0xb57   :  { %v1099_v39 = vmul.f32 %v1097_v37, %v1081_v19 }
 0xb58   :  { %1101 = vrot.lane.b32.xlu0 %v1004_v38, %s3893_s4 }
 0xb59   :  { %1176 = vrot.lane.b32.xlu1 %v1099_v39, %s3893_s4 }
 0xbca   :  { %v1102_v40 = vpop.permute.xlu0 %1101 }
 0xbcb   :  { %v1177_v42 = vpop.permute.xlu1 %1176  ;;  %3145 = vmatmul.mubr.msk.f32.vlgmr.msra.gmra.mrb[10].mxu0 %vm198_vm1, %v1102_v40 }
 0xbcc   :  { %3156 = vmatmul.mubr.msk.f32.vlgmr.msra.gmra.mrb[10].mxu1 %vm198_vm1, %v1177_v42  ;;  %3413 = vmatpush3.bf16.msra.mxu0 %v4138_v4 }
 0xbcd   :  { %3414 = vmatprep.subr.bf16.mxu0 %v3890_v3  ;;  %3166 = vmatprep.mubr.msk.f32.mxu0 %vm3891_vm0, %v3892_v6 }
 0xbce   :  { %3419 = vmatpush3.bf16.msra.mxu1 %v4162_v25  ;;  %3177 = vmatprep.mubr.msk.f32.mxu1 %vm3891_vm0, %v3892_v6 }
 0xbcf   :  { %3420 = vmatprep.subr.bf16.mxu1 %v3890_v3 }
 0xbd0   :  { %3416 = vmatpush3.bf16.msra.mxu0 %v4149_v7 }
 0xbd1   :  { %3423 = vmatprep.subr.bf16.mxu0 %v3890_v3 }
 0xbd2   :  { %3422 = vmatpush3.bf16.msra.mxu1 %v4167_v32 }
 0xbd3   :  { %3167 = vmatmul.mubr.msk.f32.vlgmr.msra.gmra.mrb[12].mxu0 %vm198_vm1, %v1177_v42  ;;  %3429 = vmatprep.subr.bf16.mxu1 %v3890_v3 }
 0xbd4   :  { %3425 = vmatpush3.bf16.msra.mxu0 %v4164_v29  ;;  %3188 = vmatprep.mubr.msk.f32.mxu0 %vm3891_vm0, %v3892_v6 }
 0xbd5   :  { %3426 = vmatprep.subr.bf16.mxu0 %v3890_v3 }
 0xbd8   :  { %3428 = vmatpush3.bf16.msra.mxu0 %v4171_v33 }
 0xbd9   :  { %3435 = vmatprep.subr.bf16.mxu0 %v3890_v3 }
 0xc9e   :  { %v1171_v43 = vpop.f32.mrb[10].mxu0 }
 0xc9f   :  { %v1246_v44 = vpop.f32.mrb[10].mxu1  ;;  %v3146_v45 = vpop.f32.mrb[11].mxu0 }
 0xca0   :  { %v1247_v46 = vadd.f32 %v1246_v44, %v1171_v43  ;;  %v3157_v47 = vpop.f32.mrb[11].mxu1 }
 0xca2   :  { %v1250_v48 = vadd.f32 %v4201_v41, %v1247_v46 }
 0xca4   :  { %3570 = vtanh.f32 %v1250_v48  ;;  %v1251_v55 = vmul.f32 0.5, %v1250_v48 }
 0xca6   :  { %v1341_v50 = vpop.f32.mrb[12].mxu0 }
 0xca7   :  { %v1345_v51 = vadd.f32 %v1341_v50, %v1274_v49  ;;  %v3168_v52 = vpop.f32.mrb[13].mxu0 }
 0xca9   :  { %3572 = vtanh.f32 %v1345_v51  ;;  %v1346_v56 = vmul.f32 0.5, %v1345_v51 }
 0xcaa   :  { %3574 = vtanh.f32 %v1251_v55 }
 0xcab   :  { %3576 = vtanh.f32 %v1346_v56 }
 0xcae   :  { %v3571_v53 = vpop.eup %3570 }
 0xcaf   :  { %1258 = vrot.lane.b32.xlu0 %v3571_v53, %s3884_s6 }
 0xcb3   :  { %v3573_v54 = vpop.eup %3572 }
 0xcb4   :  { %1353 = vrot.lane.b32.xlu1 %v3573_v54, %s3884_s6  ;;  %v3575_v57 = vpop.eup %3574 }
 0xcb5   :  { %v1253_v58 = vadd.f32 1.0, %v3575_v57  ;;  %v3577_v59 = vpop.eup %3576 }
 0xcb6   :  { %v1348_v62 = vadd.f32 1.0, %v3577_v59 }
 0xcb7   :  { %v1254_v60 = vmul.f32 0.5, %v1253_v58 }
 0xcb8   :  { %v1349_v0 = vmul.f32 0.5, %v1348_v62 }
 0xcb9   :  { %v1256_v5 = vmul.f32 %v1254_v60, %v4285_v30 }
 0xcba   :  { %v1351_v10 = vmul.f32 %v1349_v0, %v4287_v31 }
 0xd21   :  { %v1259_v61 = vpop.permute.xlu0 %1258 }
 0xd22   :  { %v1261_v63 = vmul.f32 %v1259_v61, %v1254_v60 }
 0xd24   :  { %1263 = vrot.lane.b32.xlu0 %v1261_v63, %s3884_s6 }
 0xd26   :  { %v1354_v1 = vpop.permute.xlu1 %1353 }
 0xd27   :  { %v1356_v2 = vmul.f32 %v1354_v1, %v1349_v0 }
 0xd29   :  { %1358 = vrot.lane.b32.xlu1 %v1356_v2, %s3884_s6 }
 0xd96   :  { %v1264_v8 = vpop.permute.xlu0 %1263 }
 0xd97   :  { %v4322_v9 = vadd.f32 %v1264_v8, %v1256_v5 }
 0xd99   :  { %3578 = vtanh.f32 %v4322_v9 }
 0xd9b   :  { %v1359_v11 = vpop.permute.xlu1 %1358 }
 0xd9c   :  { %v4326_v12 = vadd.f32 %v1359_v11, %v1351_v10  ;;  %v1810_v10 = vld [vmem:[#allocation6 + $0xc] sm:$0x3] }
 0xd9e   :  { %3580 = vtanh.f32 %v4326_v12 }
 0xda3   :  { %v3579_v13 = vpop.eup %3578 }
 0xda4   :  { %1269 = vrot.lane.b32.xlu0 %v3579_v13, %s3884_s6 }
 0xda8   :  { %v3581_v14 = vpop.eup %3580 }
 0xda9   :  { %1364 = vrot.lane.b32.xlu1 %v3581_v14, %s3884_s6 }
 0xe16   :  { %v1270_v15 = vpop.permute.xlu0 %1269 }
 0xe17   :  { %v1272_v16 = vmul.f32 %v1270_v15, %v1254_v60 }
 0xe19   :  { %1369 = vrot.lane.b32.xlu0 %v1272_v16, %s3893_s4 }
 0xe1b   :  { %v1365_v17 = vpop.permute.xlu1 %1364 }
 0xe1c   :  { %v1367_v18 = vmul.f32 %v1365_v17, %v1349_v0 }
 0xe1e   :  { %1444 = vrot.lane.b32.xlu1 %v1367_v18, %s3893_s4 }
 0xe8b   :  { %v1370_v19 = vpop.permute.xlu0 %1369 }
 0xe8c   :  { %3178 = vmatmul.mubr.msk.f32.vlgmr.msra.gmra.mrb[12].mxu1 %vm198_vm1, %v1370_v19 }
 0xe8d   :  { %3431 = vmatpush3.bf16.msra.mxu1 %v4138_v4  ;;  %3199 = vmatprep.mubr.msk.f32.mxu1 %vm3891_vm0, %v3892_v6 }
 0xe8e   :  { %3432 = vmatprep.subr.bf16.mxu1 %v3890_v3 }
 0xe90   :  { %v1445_v20 = vpop.permute.xlu1 %1444 }
 0xe91   :  { %3434 = vmatpush3.bf16.msra.mxu1 %v4149_v7  ;;  %3189 = vmatmul.mubr.msk.f32.vlgmr.msra.gmra.mrb[14].mxu0 %vm198_vm1, %v1445_v20 }
 0xe92   :  { %3437 = vmatpush3.bf16.msra.mxu0 %v4162_v25  ;;  %3441 = vmatprep.subr.bf16.mxu1 %v3890_v3 }
 0xe93   :  { %3438 = vmatprep.subr.bf16.mxu0 %v3890_v3  ;;  %3210 = vmatprep.mubr.msk.f32.mxu0 %vm3891_vm0, %v3892_v6 }
 0xe94   :  { %3200 = vmatmul.mubr.msk.f32.vlgmr.msra.gmra.mrb[14].mxu1 %vm198_vm1, %v1445_v20 }
 0xe95   :  { %3443 = vmatpush3.bf16.msra.mxu1 %v4164_v29  ;;  %3221 = vmatprep.mubr.msk.f32.mxu1 %vm3891_vm0, %v3892_v6 }
 0xe96   :  { %3440 = vmatpush3.bf16.msra.mxu0 %v4167_v32  ;;  %3444 = vmatprep.subr.bf16.mxu1 %v3890_v3 }
 0xe97   :  { %3447 = vmatprep.subr.bf16.mxu0 %v3890_v3 }
 0xe99   :  { %3446 = vmatpush3.bf16.msra.mxu1 %v4171_v33 }
 0xe9a   :  { %3453 = vmatprep.subr.bf16.mxu1 %v3890_v3 }
 0xf5f   :  { %v1439_v21 = vpop.f32.mrb[12].mxu1 }
 0xf60   :  { %v3179_v22 = vpop.f32.mrb[13].mxu1 }
 0xf64   :  { %v1514_v23 = vpop.f32.mrb[14].mxu0 }
 0xf65   :  { %v1515_v24 = vadd.f32 %v1514_v23, %v1439_v21  ;;  %v3190_v26 = vpop.f32.mrb[15].mxu0 }
 0xf67   :  { %v1518_v28 = vadd.f32 %v4201_v41, %v1515_v24  ;;  %v1609_v30 = vpop.f32.mrb[14].mxu1 }
 0xf68   :  { %v1613_v31 = vadd.f32 %v1609_v30, %v1542_v27  ;;  %v3201_v34 = vpop.f32.mrb[15].mxu1 }
 0xf69   :  { %3582 = vtanh.f32 %v1518_v28  ;;  %v1519_v37 = vmul.f32 0.5, %v1518_v28 }
 0xf6a   :  { %3584 = vtanh.f32 %v1613_v31  ;;  %v1614_v38 = vmul.f32 0.5, %v1613_v31 }
 0xf6b   :  { %3586 = vtanh.f32 %v1519_v37 }
 0xf6c   :  { %3588 = vtanh.f32 %v1614_v38 }
 0xf73   :  { %v3583_v35 = vpop.eup %3582 }
 0xf74   :  { %v3585_v36 = vpop.eup %3584  ;;  %1526 = vrot.lane.b32.xlu0 %v3583_v35, %s3884_s6 }
 0xf75   :  { %1621 = vrot.lane.b32.xlu1 %v3585_v36, %s3884_s6  ;;  %v3587_v39 = vpop.eup %3586 }
 0xf76   :  { %v3589_v40 = vpop.eup %3588  ;;  %v1521_v42 = vadd.f32 1.0, %v3587_v39 }
 0xf77   :  { %v1616_v43 = vadd.f32 1.0, %v3589_v40 }
 0xf78   :  { %v1522_v44 = vmul.f32 0.5, %v1521_v42 }
 0xf79   :  { %v1617_v45 = vmul.f32 0.5, %v1616_v43 }
 0xf7a   :  { %v1524_v50 = vmul.f32 %v1522_v44, %v4322_v9 }
 0xf7b   :  { %v1619_v51 = vmul.f32 %v1617_v45, %v4326_v12 }
 0xfe6   :  { %v1527_v46 = vpop.permute.xlu0 %1526 }
 0xfe7   :  { %v1622_v47 = vpop.permute.xlu1 %1621  ;;  %v1529_v48 = vmul.f32 %v1527_v46, %v1522_v44 }
 0xfe8   :  { %v1624_v49 = vmul.f32 %v1622_v47, %v1617_v45 }
 0xfe9   :  { %1531 = vrot.lane.b32.xlu0 %v1529_v48, %s3884_s6 }
 0xfea   :  { %1626 = vrot.lane.b32.xlu1 %v1624_v49, %s3884_s6  ;;  %v2078_v49 = vld [vmem:[#allocation6 + $0xe] sm:$0x3] }
0x105b   :  { %v1532_v52 = vpop.permute.xlu0 %1531 }
0x105c   :  { %v1627_v53 = vpop.permute.xlu1 %1626  ;;  %v4361_v54 = vadd.f32 %v1532_v52, %v1524_v50 }
0x105d   :  { %v4363_v55 = vadd.f32 %v1627_v53, %v1619_v51 }
0x105e   :  { %3590 = vtanh.f32 %v4361_v54 }
0x105f   :  { %3592 = vtanh.f32 %v4363_v55 }
0x1068   :  { %v3591_v56 = vpop.eup %3590 }
0x1069   :  { %v3593_v57 = vpop.eup %3592  ;;  %1537 = vrot.lane.b32.xlu0 %v3591_v56, %s3884_s6 }
0x106a   :  { %1632 = vrot.lane.b32.xlu1 %v3593_v57, %s3884_s6 }
0x10db   :  { %v1538_v58 = vpop.permute.xlu0 %1537 }
0x10dc   :  { %v1633_v59 = vpop.permute.xlu1 %1632  ;;  %v1540_v60 = vmul.f32 %v1538_v58, %v1522_v44 }
0x10dd   :  { %v1635_v61 = vmul.f32 %v1633_v59, %v1617_v45 }
0x10de   :  { %1637 = vrot.lane.b32.xlu0 %v1540_v60, %s3893_s4 }
0x10df   :  { %1712 = vrot.lane.b32.xlu1 %v1635_v61, %s3893_s4 }
0x1150   :  { %v1638_v62 = vpop.permute.xlu0 %1637 }
0x1151   :  { %v1713_v63 = vpop.permute.xlu1 %1712  ;;  %3211 = vmatmul.mubr.msk.f32.vlgmr.msra.gmra.mrb[16].mxu0 %vm198_vm1, %v1638_v62 }
0x1152   :  { %3222 = vmatmul.mubr.msk.f32.vlgmr.msra.gmra.mrb[16].mxu1 %vm198_vm1, %v1713_v63  ;;  %3449 = vmatpush3.bf16.msra.mxu0 %v4138_v4 }
0x1153   :  { %3450 = vmatprep.subr.bf16.mxu0 %v3890_v3  ;;  %3232 = vmatprep.mubr.msk.f32.mxu0 %vm3891_vm0, %v3892_v6 }
0x1154   :  { %3455 = vmatpush3.bf16.msra.mxu1 %v4162_v25  ;;  %3243 = vmatprep.mubr.msk.f32.mxu1 %vm3891_vm0, %v3892_v6 }
0x1155   :  { %3456 = vmatprep.subr.bf16.mxu1 %v3890_v3 }
0x1156   :  { %3452 = vmatpush3.bf16.msra.mxu0 %v4149_v7 }
0x1157   :  { %3459 = vmatprep.subr.bf16.mxu0 %v3890_v3 }
0x1158   :  { %3458 = vmatpush3.bf16.msra.mxu1 %v4167_v32 }
0x1159   :  { %3233 = vmatmul.mubr.msk.f32.vlgmr.msra.gmra.mrb[18].mxu0 %vm198_vm1, %v1713_v63  ;;  %3465 = vmatprep.subr.bf16.mxu1 %v3890_v3 }
0x115a   :  { %3461 = vmatpush3.bf16.msra.mxu0 %v4164_v29  ;;  %3254 = vmatprep.mubr.msk.f32.mxu0 %vm3891_vm0, %v3892_v6 }
0x115b   :  { %3462 = vmatprep.subr.bf16.mxu0 %v3890_v3 }
0x115e   :  { %3464 = vmatpush3.bf16.msra.mxu0 %v4171_v33 }
0x115f   :  { %3471 = vmatprep.subr.bf16.mxu0 %v3890_v3 }
0x1224   :  { %v1707_v0 = vpop.f32.mrb[16].mxu0 }
0x1225   :  { %v1782_v1 = vpop.f32.mrb[16].mxu1  ;;  %v3212_v2 = vpop.f32.mrb[17].mxu0 }
0x1226   :  { %v1783_v5 = vadd.f32 %v1782_v1, %v1707_v0  ;;  %v3223_v8 = vpop.f32.mrb[17].mxu1 }
0x1228   :  { %v1786_v9 = vadd.f32 %v4201_v41, %v1783_v5 }
0x122a   :  { %3594 = vtanh.f32 %v1786_v9  ;;  %v1787_v16 = vmul.f32 0.5, %v1786_v9 }
0x122c   :  { %v1877_v11 = vpop.f32.mrb[18].mxu0 }
0x122d   :  { %v1881_v12 = vadd.f32 %v1877_v11, %v1810_v10  ;;  %v3234_v13 = vpop.f32.mrb[19].mxu0 }
0x122f   :  { %3596 = vtanh.f32 %v1881_v12  ;;  %v1882_v17 = vmul.f32 0.5, %v1881_v12 }
0x1230   :  { %3598 = vtanh.f32 %v1787_v16 }
0x1231   :  { %3600 = vtanh.f32 %v1882_v17 }
0x1234   :  { %v3595_v14 = vpop.eup %3594 }
0x1235   :  { %1794 = vrot.lane.b32.xlu0 %v3595_v14, %s3884_s6 }
0x1239   :  { %v3597_v15 = vpop.eup %3596 }
0x123a   :  { %1889 = vrot.lane.b32.xlu1 %v3597_v15, %s3884_s6  ;;  %v3599_v18 = vpop.eup %3598 }
0x123b   :  { %v1789_v19 = vadd.f32 1.0, %v3599_v18  ;;  %v3601_v20 = vpop.eup %3600 }
0x123c   :  { %v1884_v23 = vadd.f32 1.0, %v3601_v20 }
0x123d   :  { %v1790_v21 = vmul.f32 0.5, %v1789_v19 }
0x123e   :  { %v1885_v26 = vmul.f32 0.5, %v1884_v23 }
0x123f   :  { %v1792_v30 = vmul.f32 %v1790_v21, %v4361_v54 }
0x1240   :  { %v1887_v35 = vmul.f32 %v1885_v26, %v4363_v55 }
0x12a7   :  { %v1795_v22 = vpop.permute.xlu0 %1794 }
0x12a8   :  { %v1797_v24 = vmul.f32 %v1795_v22, %v1790_v21 }
0x12aa   :  { %1799 = vrot.lane.b32.xlu0 %v1797_v24, %s3884_s6 }
0x12ac   :  { %v1890_v27 = vpop.permute.xlu1 %1889 }
0x12ad   :  { %v1892_v28 = vmul.f32 %v1890_v27, %v1885_v26 }
0x12af   :  { %1894 = vrot.lane.b32.xlu1 %v1892_v28, %s3884_s6 }
0x131c   :  { %v1800_v31 = vpop.permute.xlu0 %1799 }
0x131d   :  { %v4398_v34 = vadd.f32 %v1800_v31, %v1792_v30 }
0x131f   :  { %3602 = vtanh.f32 %v4398_v34 }
0x1321   :  { %v1895_v36 = vpop.permute.xlu1 %1894 }
0x1322   :  { %v4402_v37 = vadd.f32 %v1895_v36, %v1887_v35  ;;  %v2346_v36 = vld [vmem:[#allocation13] sm:$0x3f] }
0x1324   :  { %3604 = vtanh.f32 %v4402_v37 }
0x1329   :  { %v3603_v38 = vpop.eup %3602 }
0x132a   :  { %1805 = vrot.lane.b32.xlu0 %v3603_v38, %s3884_s6 }
0x132e   :  { %v3605_v39 = vpop.eup %3604 }
0x132f   :  { %1900 = vrot.lane.b32.xlu1 %v3605_v39, %s3884_s6 }
0x139c   :  { %v1806_v40 = vpop.permute.xlu0 %1805 }
0x139d   :  { %v1808_v42 = vmul.f32 %v1806_v40, %v1790_v21  ;;  %v2436_v40 = vld [vmem:[#allocation16] sm:$0xff] }
0x139f   :  { %1905 = vrot.lane.b32.xlu0 %v1808_v42, %s3893_s4  ;;  %v2437_v42 = vld [vmem:[#allocation16 + $0x8] sm:$0xff] }
0x13a1   :  { %v1901_v43 = vpop.permute.xlu1 %1900 }
0x13a2   :  { %v1903_v44 = vmul.f32 %v1901_v43, %v1885_v26  ;;  %v2432_v43 = vld [vmem:[%s4529_s10] sm:$0xff] }
0x13a4   :  { %1980 = vrot.lane.b32.xlu1 %v1903_v44, %s3893_s4  ;;  %v3484_v44 = vpack.c.bf16 %v2437_v42, %v2436_v40 }
0x1411   :  { %v1906_v45 = vpop.permute.xlu0 %1905 }
0x1412   :  { %3244 = vmatmul.mubr.msk.f32.vlgmr.msra.gmra.mrb[18].mxu1 %vm198_vm1, %v1906_v45  ;;  %v2433_v45 = vld [vmem:[%s4529_s10 + $0x8] sm:$0xff] }
0x1413   :  { %3467 = vmatpush3.bf16.msra.mxu1 %v4138_v4  ;;  %3265 = vmatprep.mubr.msk.f32.mxu1 %vm3891_vm0, %v3892_v6 }
0x1414   :  { %3468 = vmatprep.subr.bf16.mxu1 %v3890_v3 }
0x1416   :  { %v1981_v46 = vpop.permute.xlu1 %1980 }
0x1417   :  { %3470 = vmatpush3.bf16.msra.mxu1 %v4149_v7  ;;  %3255 = vmatmul.mubr.msk.f32.vlgmr.msra.gmra.mrb[20].mxu0 %vm198_vm1, %v1981_v46 }
0x1418   :  { %3477 = vmatprep.subr.bf16.mxu1 %v3890_v3  ;;  %3473 = vmatpush3.bf16.msra.mxu0 %v4162_v25 }
0x1419   :  { %3474 = vmatprep.subr.bf16.mxu0 %v3890_v3  ;;  %3276 = vmatprep.mubr.msk.f32.mxu0 %vm3891_vm0, %v3892_v6 }
0x141a   :  { %3266 = vmatmul.mubr.msk.f32.vlgmr.msra.gmra.mrb[20].mxu1 %vm198_vm1, %v1981_v46  ;;  %v2438_v46 = vld [vmem:[#allocation16 + $0x10] sm:$0xff] }
0x141b   :  { %3479 = vmatpush3.bf16.msra.mxu1 %v4164_v29  ;;  %3287 = vmatprep.mubr.msk.f32.mxu1 %vm3891_vm0, %v3892_v6 }
0x141c   :  { %3480 = vmatprep.subr.bf16.mxu1 %v3890_v3  ;;  %3476 = vmatpush3.bf16.msra.mxu0 %v4167_v32 }
0x141d   :  { %3290 = vmatprep.subr.mxu0 %v3892_v6 }
0x141f   :  { %3482 = vmatpush3.bf16.msra.mxu1 %v4171_v33 }
0x1420   :  { %3483 = vmatprep.subr.bf16.mxu1 %v3890_v3 }
0x14e5   :  { %v1975_v4 = vpop.f32.mrb[18].mxu1 }
0x14e6   :  { %v3245_v7 = vpop.f32.mrb[19].mxu1 }
0x14e7   :  { %v2439_v7 = vld [vmem:[#allocation16 + $0x18] sm:$0xff] }
0x14ea   :  { %v2050_v25 = vpop.f32.mrb[20].mxu0 }
0x14eb   :  { %v2051_v47 = vadd.f32 %v2050_v25, %v1975_v4  ;;  %v3256_v48 = vpop.f32.mrb[21].mxu0  ;;  %v3490_v4 = vpack.c.bf16 %v2433_v45, %v2432_v43  ;;  %v2434_v25 = vld [vmem:[%s4529_s10 + $0x10] sm:$0xff] }
0x14ec   :  { %v3487_v48 = vpack.c.bf16 %v2439_v7, %v2438_v46 }
0x14ed   :  { %v2054_v29 = vadd.f32 %v4201_v41, %v2051_v47  ;;  %v2145_v50 = vpop.f32.mrb[20].mxu1  ;;  %v2435_v47 = vld [vmem:[%s4529_s10 + $0x18] sm:$0xff] }
0x14ee   :  { %v2149_v51 = vadd.f32 %v2145_v50, %v2078_v49  ;;  %v3267_v52 = vpop.f32.mrb[21].mxu1  ;;  %v3493_v49 = vpack.c.bf16 %v2435_v47, %v2434_v25  ;;  %v2873_v50 = vld [vmem:[#allocation15] ss:$0 sm:$0xff] }
0x14ef   :  { %3606 = vtanh.f32 %v2054_v29  ;;  %v2055_v33 = vmul.f32 0.5, %v2054_v29 }
0x14f0   :  { %3608 = vtanh.f32 %v2149_v51  ;;  %v2150_v54 = vmul.f32 0.5, %v2149_v51 }
0x14f1   :  { %3610 = vtanh.f32 %v2055_v33 }
0x14f2   :  { %3612 = vtanh.f32 %v2150_v54 }
0x14f9   :  { %v3607_v32 = vpop.eup %3606 }
0x14fa   :  { %v3609_v53 = vpop.eup %3608  ;;  %2062 = vrot.lane.b32.xlu0 %v3607_v32, %s3884_s6 }
0x14fb   :  { %2157 = vrot.lane.b32.xlu1 %v3609_v53, %s3884_s6  ;;  %v3611_v55 = vpop.eup %3610 }
0x14fc   :  { %v3613_v56 = vpop.eup %3612  ;;  %v2057_v57 = vadd.f32 1.0, %v3611_v55 }
0x14fd   :  { %v2152_v58 = vadd.f32 1.0, %v3613_v56 }
0x14fe   :  { %v2058_v59 = vmul.f32 0.5, %v2057_v57  ;;  %v2597_v57 = vld [vmem:[#allocation18] sm:$0xff] }
0x14ff   :  { %v2153_v60 = vmul.f32 0.5, %v2152_v58  ;;  %v2598_v58 = vld [vmem:[#allocation18 + $0x8] sm:$0xff] }
0x1500   :  { %v2060_v1 = vmul.f32 %v2058_v59, %v4398_v34 }
0x1501   :  { %v2155_v2 = vmul.f32 %v2153_v60, %v4402_v37  ;;  %v2345_v37 = vld [vmem:[%s4521_s2] sm:$0x3] }
0x156c   :  { %v2063_v61 = vpop.permute.xlu0 %2062 }
0x156d   :  { %v2158_v62 = vpop.permute.xlu1 %2157  ;;  %v2065_v63 = vmul.f32 %v2063_v61, %v2058_v59  ;;  %v2600_v61 = vld [vmem:[#allocation18 + $0x18] sm:$0xff] }
0x156e   :  { %v2160_v0 = vmul.f32 %v2158_v62, %v2153_v60 }
0x156f   :  { %2067 = vrot.lane.b32.xlu0 %v2065_v63, %s3884_s6  ;;  %v2682_v63 = vld [vmem:[%s4534_s15] sm:$0xff] }
0x1570   :  { %2162 = vrot.lane.b32.xlu1 %v2160_v0, %s3884_s6 }
0x15e1   :  { %v2068_v5 = vpop.permute.xlu0 %2067 }
0x15e2   :  { %v2163_v8 = vpop.permute.xlu1 %2162  ;;  %v2070_v9 = vadd.f32 %v2068_v5, %v2060_v1 }
0x15e3   :  { %v2165_v10 = vadd.f32 %v2163_v8, %v2155_v2  ;;  %v2878_v2 = vld [vmem:[%s4531_s12] ss:$0 sm:$0xff] }
0x15e4   :  { %3614 = vtanh.f32 %v2070_v9 }
0x15e5   :  { %3616 = vtanh.f32 %v2165_v10 }
0x15ee   :  { %v3615_v11 = vpop.eup %3614 }
0x15ef   :  { %v3617_v12 = vpop.eup %3616  ;;  %2073 = vrot.lane.b32.xlu0 %v3615_v11, %s3884_s6  ;;  %v2684_v11 = vld [vmem:[%s4534_s15 + $0x10] sm:$0xff] }
0x15f0   :  { %2168 = vrot.lane.b32.xlu1 %v3617_v12, %s3884_s6  ;;  %v2685_v12 = vld [vmem:[%s4534_s15 + $0x18] sm:$0xff] }
0x1661   :  { %v2074_v13 = vpop.permute.xlu0 %2073 }
0x1662   :  { %v2169_v14 = vpop.permute.xlu1 %2168  ;;  %v2076_v15 = vmul.f32 %v2074_v13, %v2058_v59  ;;  %v3496_v59 = vpack.c.bf16 %v2598_v58, %v2597_v57  ;;  %v2770_v13 = vld [vmem:[#allocation7] sm:$0x3] }
0x1663   :  { %v2171_v16 = vmul.f32 %v2169_v14, %v2153_v60  ;;  %v2599_v60 = vld [vmem:[#allocation18 + $0x10] sm:$0xff]  ;;  %v2879_v14 = vld [vmem:[%s4533_s14] ss:$0 sm:$0xff]  ;;  %s182_s14 = sld [smem:[#allocation2]] }
0x1664   :  { %2173 = vrot.lane.b32.xlu0 %v2076_v15, %s3893_s4  ;;  %v3499_v62 = vpack.c.bf16 %v2600_v61, %v2599_v60 }
0x1665   :  { %2248 = vrot.lane.b32.xlu1 %v2171_v16, %s3893_s4 }
0x16d6   :  { %v2174_v17 = vpop.permute.xlu0 %2173 }
0x16d7   :  { %v2249_v18 = vpop.permute.xlu1 %2248  ;;  %3277 = vmatmul.mubr.msk.f32.vlgmr.msra.gmra.mrb[22].mxu0 %vm198_vm1, %v2174_v17 }
0x16d8   :  { %3288 = vmatmul.mubr.msk.f32.vlgmr.msra.gmra.mrb[22].mxu1 %vm198_vm1, %v2249_v18  ;;  %3292 = vmatprep.mubr.msk.f32.mxu0 %vm3891_vm0, %v3892_v6 }
0x16d9   :  { %3303 = vmatprep.mubr.msk.f32.mxu1 %vm3891_vm0, %v3892_v6  ;;  %3291 = vmatpush3.msk.msra.mxu0 %vm2358_vm2, %v2346_v36 }
0x16da   :  { %3489 = vmatprep.subr.bf16.mxu0 %v3890_v3  ;;  %3485 = vmatpush3.bf16.msra.mxu1 %v3484_v44 }
0x16db   :  { %3293 = vmatmul.mubr.msk.f32.vlgmr.msra.gmra.mrb[24].mxu0 %vm2354_vm3, %v2345_v37  ;;  %3486 = vmatprep.subr.bf16.mxu1 %v3890_v3 }
0x16dc   :  { %3314 = vmatprep.mubr.msk.f32.mxu0 %vm3891_vm0, %v3892_v6  ;;  %3491 = vmatpush3.bf16.msra.mxu0 %v3490_v4 }
0x16dd   :  { %3492 = vmatprep.subr.bf16.mxu0 %v3890_v3 }
0x16de   :  { %3488 = vmatpush3.bf16.msra.mxu1 %v3487_v48 }
0x16df   :  { %3495 = vmatprep.subr.bf16.mxu1 %v3890_v3 }
0x16e0   :  { %3494 = vmatpush3.bf16.msra.mxu0 %v3493_v49 }
0x16e1   :  { %3501 = vmatprep.subr.bf16.mxu0 %v3890_v3 }
0x17aa   :  { %v2243_v19 = vpop.f32.mrb[22].mxu0 }
0x17ab   :  { %v2318_v20 = vpop.f32.mrb[22].mxu1  ;;  %v3278_v21 = vpop.f32.mrb[23].mxu0 }
0x17ac   :  { %v2319_v22 = vadd.f32 %v2318_v20, %v2243_v19  ;;  %v3289_v23 = vpop.f32.mrb[23].mxu1  ;;  %v2881_v19 = vld [vmem:[%s4535_s16] ss:$0 sm:$0xff]  ;;  %s2849_s16 = sld [smem:[#allocation2 + $0x1]] }
0x17ae   :  { %v2322_v24 = vadd.f32 %v4201_v41, %v2319_v22  ;;  %v2428_v51 = vpop.f32.mrb[24].mxu0 }
0x17af   :  { %v2429_v52 = vadd.f32 %v2873_v50, %v2428_v51  ;;  %v3294_v32 = vpop.f32.mrb[25].mxu0 }
0x17b0   :  { %3618 = vtanh.f32 %v2322_v24  ;;  %v2323_v27 = vmul.f32 0.5, %v2322_v24 }
0x17b1   :  { %3304 = vmatmul.mubr.msk.f32.vlgmr.msra.gmra.mrb[24].mxu1 %vm198_vm1, %v2429_v52 }
0x17b2   :  { %3620 = vtanh.f32 %v2323_v27  ;;  %3325 = vmatprep.mubr.msk.f32.mxu1 %vm3891_vm0, %v3892_v6  ;;  %3497 = vmatpush3.bf16.msra.mxu1 %v3496_v59  ;;  %s2819_s8 = ssub.f32 %s2849_s16, %s182_s14  ;;  %v2822_v59 = vstv %s182_s14 }
0x17b3   :  { %3498 = vmatprep.subr.bf16.mxu1 %v3890_v3 }
0x17b4   :  { %v2820_v57 = vstv %s2819_s8 }
0x17b6   :  { %3500 = vmatpush3.bf16.msra.mxu1 %v3499_v62 }
0x17ba   :  { %v3619_v26 = vpop.eup %3618 }
0x17bb   :  { %2330 = vrot.lane.b32.xlu0 %v3619_v26, %s3884_s6 }
0x17bc   :  { %v3621_v28 = vpop.eup %3620 }
0x17bd   :  { %v2325_v30 = vadd.f32 1.0, %v3621_v28 }
0x17bf   :  { %v2326_v31 = vmul.f32 0.5, %v2325_v30 }
0x17c1   :  { %v2328_v41 = vmul.f32 %v2326_v31, %v2070_v9 }
0x182d   :  { %v2331_v34 = vpop.permute.xlu0 %2330 }
0x182e   :  { %v2333_v35 = vmul.f32 %v2331_v34, %v2326_v31 }
0x1830   :  { %2335 = vrot.lane.b32.xlu1 %v2333_v35, %s3884_s6 }
0x1884   :  { %v2509_v55 = vpop.f32.mrb[24].mxu1 }
0x1885   :  { %v3305_v56 = vpop.f32.mrb[25].mxu1 }
0x18a2   :  { %v2336_v38 = vpop.permute.xlu1 %2335 }
0x18a3   :  { %v2338_v39 = vadd.f32 %v2336_v38, %v2328_v41 }
0x18a5   :  { %3622 = vtanh.f32 %v2338_v39 }
0x18af   :  { %v3623_v29 = vpop.eup %3622 }
0x18b0   :  { %2341 = vrot.lane.b32.xlu0 %v3623_v29, %s3884_s6 }
0x18b4   :  { %2772 = vrot.lane.b32.xlu0 %v2770_v13, %s3894_s24 }
0x1922   :  { %v2342_v53 = vpop.permute.xlu0 %2341 }
0x1923   :  { %v2344_v33 = vmul.f32 %v2342_v53, %v2326_v31  ;;  %v2781_v31 = vmul.f32 -0.5, %v2770_v13 }
0x1925   :  { %2514 = vrot.lane.b32.xlu1 %v2344_v33, %s3893_s4  ;;  %v2782_v34 = vmul.f32 %v2781_v31, %v2770_v13  ;;  %s3896_s4 = smov [#allocation19]  }
0x1926   :  { %v2773_v27 = vpop.permute.xlu0 %2772  ;;  %s2835_s7 = sshll.u32 %s3896_s4, 4  ;;  %s2836_s7 = int_to_ptr.vmem [resolvable:$true] %s2835_s7 }
0x1927   :  { %s3840_s28 = scalar_lea.vmem %s2836_s7, 32  ;;  %p3845_p6 = scmp.lt.s32.totalorder %s2836_s7, %s2836_s7 }
0x1928   :  { %p3841_p5 = scmp.ne.s32.totalorder %s2836_s7, %s3840_s28  ;;  %p3846_p7 = scmp.lt.s32.totalorder %s3840_s28, %s3840_s28 }
0x192a   :  { %p3847_p8 = por %p3846_p7, %p3845_p6 }
0x192c   :  { %p3848_p9 = pnand %p3847_p8, %p3841_p5 }
0x1997   :  { %v2515_v54 = vpop.permute.xlu1 %2514 }
0x1998   :  { %3315 = vmatmul.mubr.msk.f32.vlgmr.msra.gmra.mrb[26].mxu0 %vm198_vm1, %v2515_v54 }
0x1999   :  { %3336 = vmatprep.mubr.msk.f32.mxu0 %vm3891_vm0, %v3892_v6  ;;  %v2683_v6 = vld [vmem:[%s4534_s15 + $0x8] sm:$0xff]  ;;  %s3895_s15 = smov 124  }
0x199a   :  { %v3502_v0 = vpack.c.bf16 %v2683_v6, %v2682_v63 }
0x199c   :  { %3503 = vmatpush3.bf16.msra.mxu0 %v3502_v0 }
0x199d   :  { %3504 = vmatprep.subr.bf16.mxu0 %v3890_v3  ;;  %v3505_v3 = vpack.c.bf16 %v2685_v12, %v2684_v11 }
0x19a0   :  { %3506 = vmatpush3.bf16.msra.mxu0 %v3505_v3 }
0x1a6b   :  { %v2584_v1 = vpop.f32.mrb[26].mxu0 }
0x1a6c   :  { %v2585_v5 = vadd.f32 %v2584_v1, %v2509_v55  ;;  %v3316_v8 = vpop.f32.mrb[27].mxu0 }
0x1a6e   :  { %v2595_v9 = vadd.f32 %v2878_v2, %v2585_v5 }
0x1a70   :  { %v2596_v10 = vmax.f32 %v2595_v9, 0.0 }
0x1a72   :  { %3326 = vmatmul.mubr.msk.f32.vlgmr.msra.gmra.mrb[26].mxu1 %vm198_vm1, %v2596_v10 }
0x1b45   :  { %v2677_v15 = vpop.f32.mrb[26].mxu1 }
0x1b46   :  { %v2678_v16 = vadd.f32 %v2879_v14, %v2677_v15  ;;  %v3327_v17 = vpop.f32.mrb[27].mxu1 }
0x1b48   :  { %v2681_v18 = vmax.f32 %v2678_v16, 0.0 }
0x1b4a   :  { %3337 = vmatmul.mubr.msk.f32.vlgmr.msra.gmra.mrb[28].mxu0 %vm198_vm1, %v2681_v18 }
0x1c1d   :  { %v2762_v20 = vpop.f32.mrb[28].mxu0 }
0x1c1e   :  { %v2763_v21 = vadd.f32 %v2881_v19, %v2762_v20  ;;  %v3338_v22 = vpop.f32.mrb[29].mxu0 }
0x1c20   :  { %v2766_v23 = vmax.f32 %v2763_v21, -20.0 }
0x1c22   :  { %v2767_v24 = vmin.f32 %v2766_v23, 2.0 }
0x1c24   :  { %v2768_v26 = vmul.f32 1.442695, %v2767_v24  ;;  %2784 = vrot.lane.b32.xlu0 %v2767_v24, %s3895_s15 }
0x1c26   :  { %3624 = vpow2.f32 %v2768_v26 }
0x1c30   :  { %v3625_v28 = vpop.eup %3624 }
0x1c31   :  { %v2775_v30 = vmul.f32 %v3625_v28, %v2773_v27 }
0x1c33   :  { %2777 = vrot.lane.b32.xlu1 %v2775_v30, %s3895_s15 }
0x1c96   :  { %v2785_v35 = vpop.permute.xlu0 %2784 }
0x1c97   :  { %v2787_v36 = vsub.f32 %v2782_v34, %v2785_v35 }
0x1c99   :  { %v2883_v37 = vadd.f32 -0.9189385, %v2787_v36 }
0x1c9b   :  { %v2790_v41 = vsel %vm2789_vm4, %v2883_v37, 0.0 }
0x1c9c   :  { %2791 = vadd.xlane.f32.xlu1 %v2790_v41 }
0x1ca5   :  { %v2778_v38 = vpop.permute.xlu1 %2777 }
0x1ca6   :  { %v2780_v39 = vadd.f32 %v2778_v38, %v2763_v21 }
0x1ca8   :  { %v2793_v40 = vmul.f32 -2.0, %v2780_v39  ;;  %v2809_v52 = vsub.f32 0.6931472, %v2780_v39 }
0x1caa   :  { %v2795_v42 = vand.u32 2147483647, %v2793_v40  ;;  %v2794_v29 = vmax.f32 %v2793_v40, 0.0 }
0x1cac   :  { %v2796_v43 = vsub.f32 0.0, %v2795_v42 }
0x1cae   :  { %v2797_v44 = vmul.f32 1.442695, %v2796_v43 }
0x1cb0   :  { %3626 = vpow2.f32 %v2797_v44 }
0x1cba   :  { %v3627_v45 = vpop.eup %3626 }
0x1cbb   :  { %v2799_v46 = vadd.f32 1.0, %v3627_v45  ;;  %v2802_v4 = vmul.f32 -0.5, %v3627_v45  ;;  %v2805_v25 = vand.u32 2147483647, %v3627_v45 }
0x1cbd   :  { %3628 = vlog2.f32 %v2799_v46  ;;  %v2803_v7 = vadd.f32 1.0, %v2802_v4  ;;  %vm2806_vm5 = vcmp.lt.f32.partialorder %v2805_v25, 0.0004427343 }
0x1cbe   :  { %3630 = vtanh.f32 %v2780_v39 }
0x1cbf   :  { %v2804_v49 = vmul.f32 %v3627_v45, %v2803_v7 }
0x1cc7   :  { %v3629_v47 = vpop.eup %3628 }
0x1cc8   :  { %v2801_v48 = vmul.f32 0.6931472, %v3629_v47  ;;  %v3631_v54 = vpop.eup %3630 }
0x1cc9   :  { %v2817_v55 = vadd.f32 1.0, %v3631_v54 }
0x1cca   :  { %v2807_v50 = vsel %vm2806_vm5, %v2804_v49, %v2801_v48 }
0x1ccb   :  { %v2808_v51 = vadd.f32 %v2807_v50, %v2794_v29  ;;  %v2818_v56 = vmul.f32 0.5, %v2817_v55 }
0x1ccd   :  { %v2810_v32 = vsub.f32 %v2809_v52, %v2808_v51  ;;  %v2821_v58 = vmul.f32 %v2820_v57, %v2818_v56 }
0x1ccf   :  { %v2811_v53 = vmul.f32 2.0, %v2810_v32  ;;  %v2823_v63 = vadd.f32 %v2822_v59, %v2821_v58 }
0x1cd1   :  { %v2812_v33 = vsel %vm2789_vm4, %v2811_v53, 0.0 }
0x1cd2   :  { %2813 = vadd.xlane.f32.xlu0 %v2812_v33 }
0x1d29   :  { %v2792_v60 = vpop.xlane.xlu1 %2791 }
0x1d5f   :  { %v2814_v61 = vpop.xlane.xlu0 %2813 }
0x1d60   :  { %v2815_v62 = vsub.f32 %v2792_v60, %v2814_v61 }
0x1d62   :  { %v2825_v6 = vsel %vm2824_vm6, %v2823_v63, %v2815_v62 }
0x1d63   :  { %v2827_v0 = vsel %vm2826_vm7, %v2825_v6, 0.0 }
0x1d64   :  { %2828 = vst [vmem:[#allocation19] sm:$0x3] %v2827_v0 }
0x1d65   :  { %3851 = shalt.err (!%p3848_p9)
}
0x1d66   :  { %s3852_s2 = scalar_lea.hbm %s4536_s17, 32 }
0x1d67   :  { %p3853_p10 = scmp.ne.s32.totalorder %s4536_s17, %s3852_s2  ;;  %p3856_p11 = scmp.lt.u32.totalorder %s3852_s2, %s4536_s17 }
0x1d69   :  { %p3858_p12 = pnand %p3856_p11, %p3853_p10 }
0x1d6b   :  { %3861 = shalt.err (!%p3858_p12)
}
0x1d6c   :  { %2838 = dma.vmem_to_hbm [thread:$0]  %s2836_s7, 32, %s4536_s17, [#allocation4]  }
0x1d6d   :  { %3874 = dma.done.wait [#allocation4], 32  }
0x1d6e   :  { %3875 = vsyncadd [#allocation4], 4294967264 }
0x1d6f   :  { %2842 = vsyncpa [#allocation3], 1 }
0x1d70   :  { %2843 = vsyncpa [#allocation8], 1 }
0x1d71   :  { %2844 = vsyncpa [#allocation11], 1 }
0x1d72   :  { %2845 = vsyncpa [#allocation14], 1 }
0x1d73   :  { %2846 = vsyncpa [#allocation17], 1 }
0x1d74   :  { %2847 = vsyncpa [#allocation4], 1 }
0x1d75   :  { %2848 = vsyncpa [#allocation5], 1 }

</bundles_post_ra>
